<compile_context>
chip_gen: v7x
topology: tpu7x:2x2x1
jax: 0.10.0
libtpu: 0.0.40
codegen_flags: <defaults>
</compile_context>

<pallas_src>
import functools

import numpy as np
import jax
import jax.numpy as jnp
from jax.experimental import pallas as pl
from jax.experimental.pallas import tpu as pltpu

# Module constants (from __init__ defaults)
IN_CHANNELS = (1024, 2048)     # feat_res4, feat_res5
DIM = 256
INDV = (128, 128)              # _split_embedding_dim() for 2 maps
FC_IN, FC_OUT = 1024, 128      # self.fc = nn.Linear(1024, 128)
LOCAL_DIM = 128
EMB_DIM = DIM + FC_OUT + LOCAL_DIM   # 512
BN_EPS = 1e-5
DEFAULT_TM = 512               # max proposal-row tile
MIN_GRID_STEPS = 4             # target >=4 grid steps when N allows (v7x dual-TC, pipelining)


def _nae_kernel(b_img, x1_ref, x2_ref, idx_ref, loc_ref, att_ref,
                w1_ref, b1_ref, w2_ref, b2_ref, rs_ref,
                emb_ref, norm_ref):
    # projector['feat_res4'] / ['feat_res5']: x @ (W^T * bn_scale) + bn_shift  (MXU, f32 acc)
    e1 = jnp.dot(x1_ref[...], w1_ref[...], preferred_element_type=jnp.float32) + b1_ref[...]
    e2 = jnp.dot(x2_ref[...], w2_ref[...], preferred_element_type=jnp.float32) + b2_ref[...]

    # In-kernel gather of the per-image attention fc result.  att_ref is the (8-row
    # padded) per-image table (f32); idx_ref is the proposal->image index.  Select-sum
    # over the static image count (VPU broadcasts only) — no (N,128) HBM round trip.
    idx = idx_ref[...]                                    # (TM, 1) int32
    att = att_ref[...]                                    # (8, 128) f32, rows [0, b_img) valid
    ea = (idx == 0).astype(jnp.float32) * att[0:1, :]     # (TM, 128)
    for b in range(1, b_img):
        ea = ea + (idx == b).astype(jnp.float32) * att[b:b + 1, :]

    el = loc_ref[...].astype(jnp.float32)                 # local_feature (bf16 -> f32)

    # L2 norm over the (virtual) concatenated feature axis, computed piecewise (XLU).
    sq = (jnp.sum(e1 * e1, axis=1, keepdims=True)
          + jnp.sum(e2 * e2, axis=1, keepdims=True)
          + jnp.sum(ea * ea, axis=1, keepdims=True)
          + jnp.sum(el * el, axis=1, keepdims=True))      # (TM, 1)
    inv = jax.lax.rsqrt(jnp.maximum(sq, 1e-24))           # == 1 / clamp(norm, 1e-12)
    norm = sq * inv                                       # == sqrt(sq); one fewer EUP op

    # torch.cat([...], dim=1) / clamp(norm) expressed as lane-aligned slice stores,
    # cast to the (bf16) output dtype at the store; all epilogue math stays f32.
    odt = emb_ref.dtype
    emb_ref[:, 0:INDV[0]] = (e1 * inv).astype(odt)
    emb_ref[:, INDV[0]:DIM] = (e2 * inv).astype(odt)
    emb_ref[:, DIM:DIM + FC_OUT] = (ea * inv).astype(odt)
    emb_ref[:, DIM + FC_OUT:EMB_DIM] = (el * inv).astype(odt)

    # rescaler = BatchNorm1d(1) (eval mode) folded to [scale, shift] scalars in SMEM
    norm_ref[...] = norm * rs_ref[0] + rs_ref[1]


def _choose_tm(n, tm_max, min_steps=MIN_GRID_STEPS):
    """Row tile: sublane(8)-aligned; capped so the grid has >= min_steps steps when N is
    large enough (v7x dual-TC sharding + input/output DMA pipelining), never below 128
    rows (per-step overhead ~0.35us), never above tm_max (VMEM budget incl. v7x 64 MiB)."""
    if n <= 8:
        return max(n, 1)                           # block == full array dim (always legal)
    aligned_n = (n // 8) * 8
    target = ((-(-n // min_steps)) + 7) // 8 * 8   # round_up(cdiv(n, min_steps), 8)
    return max(8, min(aligned_n, max(128, min(tm_max, target))))


def norm_aware_embedding(x1, x2, prop_img_idx, local, att_fc,
                         w1t_s, shift1, w2t_s, shift2, rs,
                         *, tm=DEFAULT_TM, out_dtype=jnp.bfloat16):
    """x1:(N,1024) bf16, x2:(N,2048) bf16, prop_img_idx:(N,) int, local:(N,128) bf16,
    att_fc:(B_img,128) f32 per-image fc output, w*t_s: BN-scale-folded transposed
    weights (bf16), shift*: (1,128) f32, rs: (2,) f32 [scale, shift].
    Returns ((N,512) out_dtype normalized embeddings, (N,) f32 rescaled norms)."""
    N = x1.shape[0]
    b_img = int(att_fc.shape[0])
    tm_eff = _choose_tm(N, tm)
    grid = (pl.cdiv(N, tm_eff),)     # partial last block OK: all ops are row-local

    # Pad the tiny per-image table to 8 sublanes; stays f32 (bytes are negligible).
    b_pad = max(8, -(-b_img // 8) * 8)
    att_pad = jnp.zeros((b_pad, FC_OUT), jnp.float32).at[:b_img, :].set(
        att_fc.astype(jnp.float32))
    idx2d = prop_img_idx.astype(jnp.int32).reshape(N, 1)

    def row_spec(cols):
        return pl.BlockSpec((tm_eff, cols), lambda i: (i, 0))

    def build(const_mode):
        def const_spec(shape):
            if const_mode is None:
                return pl.BlockSpec(shape, lambda i: (0, 0))
            return pl.BlockSpec(shape, lambda i: (0, 0), pipeline_mode=const_mode)

        return pl.pallas_call(
            functools.partial(_nae_kernel, b_img),
            out_shape=(jax.ShapeDtypeStruct((N, EMB_DIM), out_dtype),
                       jax.ShapeDtypeStruct((N, 1), jnp.float32)),
            grid=grid,
            in_specs=[
                row_spec(IN_CHANNELS[0]),               # x1 (bf16)
                row_spec(IN_CHANNELS[1]),               # x2 (bf16)
                row_spec(1),                            # proposal -> image index (int32)
                row_spec(LOCAL_DIM),                    # local_feature (bf16)
                const_spec((b_pad, FC_OUT)),            # per-image fc table (f32)
                const_spec((IN_CHANNELS[0], INDV[0])),  # W1^T * bn_scale (bf16)
                const_spec((1, INDV[0])),               # bn shift 1 (f32)
                const_spec((IN_CHANNELS[1], INDV[1])),  # W2^T * bn_scale (bf16)
                const_spec((1, INDV[1])),               # bn shift 2 (f32)
                pl.BlockSpec(memory_space=pltpu.MemorySpace.SMEM),  # rescaler [scale, shift]
            ],
            out_specs=(pl.BlockSpec((tm_eff, EMB_DIM), lambda i: (i, 0)),
                       pl.BlockSpec((tm_eff, 1), lambda i: (i, 0))),
            compiler_params=pltpu.CompilerParams(
                dimension_semantics=("parallel",),
                vmem_limit_bytes=32 * 1024 * 1024),
        )

    args = (x1, x2, idx2d, local, att_pad, w1t_s, shift1, w2t_s, shift2, rs)
    try:
        # Grid-invariant operands single-buffered: their index_map is constant so the
        # second pipeline buffer is pure VMEM waste (~0.8 MiB; matters most on v7x).
        emb, norms = build(pl.Buffered(1))(*args)
    except Exception:
        # Fallback for pallas versions that reject buffer_count=1 on pallas_call inputs.
        emb, norms = build(None)(*args)

    return emb, norms[:, 0]


def _fold_bn(lin_bias, gamma, beta, mean, var, eps=BN_EPS):
    scale = gamma / jnp.sqrt(var + eps)
    shift = (lin_bias - mean) * scale + beta
    return scale.reshape(1, -1), shift.reshape(1, -1)


if __name__ == "__main__":
    key = jax.random.PRNGKey(0)
    ks = jax.random.split(key, 12)

    # ---- module parameters (deterministic, synthetic) ----
    # projectors: Linear weight ~ N(0, 0.01), bias = 0 ; BN gamma ~ N(0, 0.01), beta = 0
    w1 = 0.01 * jax.random.normal(ks[0], (INDV[0], IN_CHANNELS[0]), jnp.float32)   # (out,in)
    b1_lin = jnp.zeros((INDV[0],), jnp.float32)
    g1 = 0.01 * jax.random.normal(ks[1], (INDV[0],), jnp.float32)
    beta1 = jnp.zeros((INDV[0],), jnp.float32)

    w2 = 0.01 * jax.random.normal(ks[2], (INDV[1], IN_CHANNELS[1]), jnp.float32)
    b2_lin = jnp.zeros((INDV[1],), jnp.float32)
    g2 = 0.01 * jax.random.normal(ks[3], (INDV[1],), jnp.float32)
    beta2 = jnp.zeros((INDV[1],), jnp.float32)

    # fc: synthetic deterministic init
    wfc = 0.02 * jax.random.normal(ks[4], (FC_OUT, FC_IN), jnp.float32)
    bfc_vec = 0.02 * jax.random.normal(ks[5], (FC_OUT,), jnp.float32)

    # running stats at init (eval mode)
    mean128 = jnp.zeros((128,), jnp.float32)
    var128 = jnp.ones((128,), jnp.float32)

    # rescaler BatchNorm1d(1): gamma=1, beta=0, mean=0, var=1 (eval mode)
    rs_scale = 1.0 / np.sqrt(1.0 + BN_EPS)
    rs = jnp.array([rs_scale, 0.0], jnp.float32)

    # ---- example inputs (NCHW for conv-style tensors) ----
    batch_pro_nums = [3, 5]
    N = sum(batch_pro_nums)            # 8 proposals
    B_img = len(batch_pro_nums)        # 2 images

    feat_res4 = jax.random.normal(ks[6], (N, IN_CHANNELS[0], 1, 1), jnp.float32)  # NCHW
    feat_res5 = jax.random.normal(ks[7], (N, IN_CHANNELS[1], 1, 1), jnp.float32)  # NCHW
    features_atten = jax.random.normal(ks[8], (B_img, 4, 16, 16), jnp.float32)    # NCHW -> 1024
    local_feature = jax.random.normal(ks[9], (N, LOCAL_DIM), jnp.float32)

    # ---- glue ----
    x1 = feat_res4.reshape(N, -1)                       # _flatten_fc_input
    x2 = feat_res5.reshape(N, -1)
    att_flat = features_atten.reshape(B_img, -1)        # (B_img, 1024)
    prop_img_idx = jnp.asarray(np.repeat(np.arange(B_img), batch_pro_nums), jnp.int32)

    # per-image fc done once outside the kernel (B_img rows, trivially cheap).  The
    # per-proposal repeat/gather happens IN-kernel, so no (N,128) array hits HBM.
    att_fc = att_flat @ wfc.T + bfc_vec                 # (B_img, 128), f32

    # fold eval-mode BN into the projector weights (scale) + per-channel shift
    scale1, shift1 = _fold_bn(b1_lin, g1, beta1, mean128, var128)
    scale2, shift2 = _fold_bn(b2_lin, g2, beta2, mean128, var128)
    w1t_s = (w1.T * scale1).astype(jnp.bfloat16)        # (1024, 128)
    w2t_s = (w2.T * scale2).astype(jnp.bfloat16)        # (2048, 128)

    # bf16 streaming operands (a real producer would emit bf16 directly)
    x1_bf = x1.astype(jnp.bfloat16)
    x2_bf = x2.astype(jnp.bfloat16)
    local_bf = local_feature.astype(jnp.bfloat16)

    emb, logits = norm_aware_embedding(x1_bf, x2_bf, prop_img_idx, local_bf, att_fc,
                                       w1t_s, shift1, w2t_s, shift2, rs)
    emb = jax.block_until_ready(emb)
    logits = jax.block_until_ready(logits)

    # ---- pure-JAX reference (same bf16 operands, f32 accumulation/epilogue) ----
    e1_ref = jnp.dot(x1_bf, w1t_s, preferred_element_type=jnp.float32) + shift1
    e2_ref = jnp.dot(x2_bf, w2t_s, preferred_element_type=jnp.float32) + shift2
    atten_ref = att_fc[prop_img_idx]                    # (N, 128) f32
    local_f32 = local_bf.astype(jnp.float32)
    emb_cat = jnp.concatenate([e1_ref, e2_ref, atten_ref, local_f32], axis=1)
    norms_ref = jnp.sqrt(jnp.sum(emb_cat * emb_cat, axis=1, keepdims=True))
    emb_ref_n = emb_cat / jnp.maximum(norms_ref, 1e-12)
    logits_ref = (norms_ref * rs_scale).squeeze()

    assert emb.shape == (N, EMB_DIM) and emb.dtype == jnp.bfloat16
    assert logits.shape == (N,) and logits.dtype == jnp.float32

    emb_f32 = np.asarray(jax.device_get(emb.astype(jnp.float32)))
    np.testing.assert_allclose(emb_f32, np.asarray(emb_ref_n), rtol=2e-2, atol=2e-3)
    np.testing.assert_allclose(np.asarray(logits), np.asarray(logits_ref), rtol=1e-4, atol=1e-4)

    print("KERNEL_OK")
</pallas_src>

<mosaic_0001>
module attributes {stable_mosaic.version = 11 : i64} {
  func.func @_nae_kernel(%arg0: i32, %arg1: memref<8x1024xbf16, #tpu.memory_space<vmem>>, %arg2: memref<8x2048xbf16, #tpu.memory_space<vmem>>, %arg3: memref<8x1xi32, #tpu.memory_space<vmem>>, %arg4: memref<8x128xbf16, #tpu.memory_space<vmem>>, %arg5: memref<8x128xf32, #tpu.memory_space<vmem>>, %arg6: memref<1024x128xbf16, #tpu.memory_space<vmem>>, %arg7: memref<1x128xf32, #tpu.memory_space<vmem>>, %arg8: memref<2048x128xbf16, #tpu.memory_space<vmem>>, %arg9: memref<1x128xf32, #tpu.memory_space<vmem>>, %arg10: memref<2xf32, #tpu.memory_space<smem>>, %arg11: memref<8x512xbf16, #tpu.memory_space<vmem>>, %arg12: memref<8x1xf32, #tpu.memory_space<vmem>>) attributes {dimension_semantics = [#tpu.dimension_semantics<parallel>], iteration_bounds = array<i64: 1>, scalar_prefetch = 0 : i64, scratch_operands = 0 : i64, tpu.core_type = #tpu.core_type<tc>, window_params = [{transform_indices = @transform_0, window_bounds = array<i64: 8, 1024>}, {transform_indices = @transform_1, window_bounds = array<i64: 8, 2048>}, {transform_indices = @transform_2, window_bounds = array<i64: 8, 1>}, {transform_indices = @transform_3, window_bounds = array<i64: 8, 128>}, {pipeline_mode = #tpu.pipeline_mode<synchronous>, transform_indices = @transform_4, window_bounds = array<i64: 8, 128>}, {pipeline_mode = #tpu.pipeline_mode<synchronous>, transform_indices = @transform_5, window_bounds = array<i64: 1024, 128>}, {pipeline_mode = #tpu.pipeline_mode<synchronous>, transform_indices = @transform_6, window_bounds = array<i64: 1, 128>}, {pipeline_mode = #tpu.pipeline_mode<synchronous>, transform_indices = @transform_7, window_bounds = array<i64: 2048, 128>}, {pipeline_mode = #tpu.pipeline_mode<synchronous>, transform_indices = @transform_8, window_bounds = array<i64: 1, 128>}, {transform_indices = @transform_9, window_bounds = array<i64: 2>}, {transform_indices = @transform_10, window_bounds = array<i64: 8, 512>}, {transform_indices = @transform_11, window_bounds = array<i64: 8, 1>}]} {
    %c0 = arith.constant 0 : index
    %c0_0 = arith.constant 0 : index
    %0 = vector.load %arg1[%c0, %c0_0] : memref<8x1024xbf16, #tpu.memory_space<vmem>>, vector<8x1024xbf16>
    %c0_1 = arith.constant 0 : index
    %c0_2 = arith.constant 0 : index
    %1 = vector.load %arg6[%c0_1, %c0_2] : memref<1024x128xbf16, #tpu.memory_space<vmem>>, vector<1024x128xbf16>
    %cst = arith.constant dense<0.000000e+00> : vector<8x128xf32>
    %2 = tpu.matmul %0, %1, %cst {dimension_numbers = #tpu.dot_dimension_numbers<[1], [0], [0], [1], [0, 0, 1, 1], [], []>} : vector<8x1024xbf16>, vector<1024x128xbf16>, vector<8x128xf32> -> vector<8x128xf32>
    %c0_3 = arith.constant 0 : index
    %c0_4 = arith.constant 0 : index
    %3 = vector.load %arg7[%c0_3, %c0_4] : memref<1x128xf32, #tpu.memory_space<vmem>>, vector<1x128xf32>
    %4 = vector.broadcast %3 : vector<1x128xf32> to vector<8x128xf32>
    %5 = arith.addf %2, %4 : vector<8x128xf32>
    %c0_5 = arith.constant 0 : index
    %c0_6 = arith.constant 0 : index
    %6 = vector.load %arg2[%c0_5, %c0_6] : memref<8x2048xbf16, #tpu.memory_space<vmem>>, vector<8x2048xbf16>
    %c0_7 = arith.constant 0 : index
    %c0_8 = arith.constant 0 : index
    %7 = vector.load %arg8[%c0_7, %c0_8] : memref<2048x128xbf16, #tpu.memory_space<vmem>>, vector<2048x128xbf16>
    %cst_9 = arith.constant dense<0.000000e+00> : vector<8x128xf32>
    %8 = tpu.matmul %6, %7, %cst_9 {dimension_numbers = #tpu.dot_dimension_numbers<[1], [0], [0], [1], [0, 0, 1, 1], [], []>} : vector<8x2048xbf16>, vector<2048x128xbf16>, vector<8x128xf32> -> vector<8x128xf32>
    %c0_10 = arith.constant 0 : index
    %c0_11 = arith.constant 0 : index
    %9 = vector.load %arg9[%c0_10, %c0_11] : memref<1x128xf32, #tpu.memory_space<vmem>>, vector<1x128xf32>
    %10 = vector.broadcast %9 : vector<1x128xf32> to vector<8x128xf32>
    %11 = arith.addf %8, %10 : vector<8x128xf32>
    %c0_12 = arith.constant 0 : index
    %c0_13 = arith.constant 0 : index
    %12 = vector.load %arg3[%c0_12, %c0_13] : memref<8x1xi32, #tpu.memory_space<vmem>>, vector<8x1xi32>
    %c0_14 = arith.constant 0 : index
    %c0_15 = arith.constant 0 : index
    %13 = vector.load %arg5[%c0_14, %c0_15] : memref<8x128xf32, #tpu.memory_space<vmem>>, vector<8x128xf32>
    %c0_i32 = arith.constant 0 : i32
    %14 = vector.broadcast %c0_i32 : i32 to vector<8x1xi32>
    %15 = arith.cmpi eq, %12, %14 : vector<8x1xi32>
    %16 = arith.extui %15 : vector<8x1xi1> to vector<8x1xi32>
    %17 = arith.sitofp %16 : vector<8x1xi32> to vector<8x1xf32>
    %18 = vector.extract_strided_slice %13 {offsets = [0, 0], sizes = [1, 128], strides = [1, 1]} : vector<8x128xf32> to vector<1x128xf32>
    %19 = vector.broadcast %17 : vector<8x1xf32> to vector<8x128xf32>
    %20 = vector.broadcast %18 : vector<1x128xf32> to vector<8x128xf32>
    %21 = arith.mulf %19, %20 : vector<8x128xf32>
    %c1_i32 = arith.constant 1 : i32
    %22 = vector.broadcast %c1_i32 : i32 to vector<8x1xi32>
    %23 = arith.cmpi eq, %12, %22 : vector<8x1xi32>
    %24 = arith.extui %23 : vector<8x1xi1> to vector<8x1xi32>
    %25 = arith.sitofp %24 : vector<8x1xi32> to vector<8x1xf32>
    %26 = vector.extract_strided_slice %13 {offsets = [1, 0], sizes = [1, 128], strides = [1, 1]} : vector<8x128xf32> to vector<1x128xf32>
    %27 = vector.broadcast %25 : vector<8x1xf32> to vector<8x128xf32>
    %28 = vector.broadcast %26 : vector<1x128xf32> to vector<8x128xf32>
    %29 = arith.mulf %27, %28 : vector<8x128xf32>
    %30 = arith.addf %21, %29 : vector<8x128xf32>
    %c0_16 = arith.constant 0 : index
    %c0_17 = arith.constant 0 : index
    %31 = vector.load %arg4[%c0_16, %c0_17] : memref<8x128xbf16, #tpu.memory_space<vmem>>, vector<8x128xbf16>
    %32 = arith.extf %31 : vector<8x128xbf16> to vector<8x128xf32>
    %33 = arith.mulf %5, %5 : vector<8x128xf32>
    %cst_18 = arith.constant dense<0.000000e+00> : vector<8xf32>
    %34 = vector.multi_reduction <add>, %33, %cst_18 [1] : vector<8x128xf32> to vector<8xf32>
    %35 = vector.shape_cast %34 : vector<8xf32> to vector<8x1xf32>
    %36 = arith.mulf %11, %11 : vector<8x128xf32>
    %cst_19 = arith.constant dense<0.000000e+00> : vector<8xf32>
    %37 = vector.multi_reduction <add>, %36, %cst_19 [1] : vector<8x128xf32> to vector<8xf32>
    %38 = vector.shape_cast %37 : vector<8xf32> to vector<8x1xf32>
    %39 = arith.addf %35, %38 : vector<8x1xf32>
    %40 = arith.mulf %30, %30 : vector<8x128xf32>
    %cst_20 = arith.constant dense<0.000000e+00> : vector<8xf32>
    %41 = vector.multi_reduction <add>, %40, %cst_20 [1] : vector<8x128xf32> to vector<8xf32>
    %42 = vector.shape_cast %41 : vector<8xf32> to vector<8x1xf32>
    %43 = arith.addf %39, %42 : vector<8x1xf32>
    %44 = arith.mulf %32, %32 : vector<8x128xf32>
    %cst_21 = arith.constant dense<0.000000e+00> : vector<8xf32>
    %45 = vector.multi_reduction <add>, %44, %cst_21 [1] : vector<8x128xf32> to vector<8xf32>
    %46 = vector.shape_cast %45 : vector<8xf32> to vector<8x1xf32>
    %47 = arith.addf %43, %46 : vector<8x1xf32>
    %cst_22 = arith.constant 1.000000e-24 : f32
    %48 = vector.broadcast %cst_22 : f32 to vector<8x1xf32>
    %49 = arith.maximumf %47, %48 : vector<8x1xf32>
    %50 = math.rsqrt %49 : vector<8x1xf32>
    %51 = arith.mulf %47, %50 : vector<8x1xf32>
    %52 = vector.broadcast %50 : vector<8x1xf32> to vector<8x128xf32>
    %53 = arith.mulf %5, %52 : vector<8x128xf32>
    %54 = arith.truncf %53 : vector<8x128xf32> to vector<8x128xbf16>
    %c0_23 = arith.constant 0 : index
    %c0_24 = arith.constant 0 : index
    %55 = vector.load %arg11[%c0_23, %c0_24] : memref<8x512xbf16, #tpu.memory_space<vmem>>, vector<8x128xbf16>
    tpu.vector_store %arg11[%c0_23, %c0_24], %54 {strides = array<i32>} : memref<8x512xbf16, #tpu.memory_space<vmem>>, vector<8x128xbf16>,
    %56 = vector.broadcast %50 : vector<8x1xf32> to vector<8x128xf32>
    %57 = arith.mulf %11, %56 : vector<8x128xf32>
    %58 = arith.truncf %57 : vector<8x128xf32> to vector<8x128xbf16>
    %c0_25 = arith.constant 0 : index
    %c128 = arith.constant 128 : index
    %59 = vector.load %arg11[%c0_25, %c128] : memref<8x512xbf16, #tpu.memory_space<vmem>>, vector<8x128xbf16>
    tpu.vector_store %arg11[%c0_25, %c128], %58 {strides = array<i32>} : memref<8x512xbf16, #tpu.memory_space<vmem>>, vector<8x128xbf16>,
    %60 = vector.broadcast %50 : vector<8x1xf32> to vector<8x128xf32>
    %61 = arith.mulf %30, %60 : vector<8x128xf32>
    %62 = arith.truncf %61 : vector<8x128xf32> to vector<8x128xbf16>
    %c0_26 = arith.constant 0 : index
    %c256 = arith.constant 256 : index
    %63 = vector.load %arg11[%c0_26, %c256] : memref<8x512xbf16, #tpu.memory_space<vmem>>, vector<8x128xbf16>
    tpu.vector_store %arg11[%c0_26, %c256], %62 {strides = array<i32>} : memref<8x512xbf16, #tpu.memory_space<vmem>>, vector<8x128xbf16>,
    %64 = vector.broadcast %50 : vector<8x1xf32> to vector<8x128xf32>
    %65 = arith.mulf %32, %64 : vector<8x128xf32>
    %66 = arith.truncf %65 : vector<8x128xf32> to vector<8x128xbf16>
    %c0_27 = arith.constant 0 : index
    %c384 = arith.constant 384 : index
    %67 = vector.load %arg11[%c0_27, %c384] : memref<8x512xbf16, #tpu.memory_space<vmem>>, vector<8x128xbf16>
    tpu.vector_store %arg11[%c0_27, %c384], %66 {strides = array<i32>} : memref<8x512xbf16, #tpu.memory_space<vmem>>, vector<8x128xbf16>,
    %c0_28 = arith.constant 0 : index
    %68 = memref.load %arg10[%c0_28] : memref<2xf32, #tpu.memory_space<smem>>
    %69 = vector.broadcast %68 : f32 to vector<8x1xf32>
    %70 = arith.mulf %51, %69 : vector<8x1xf32>
    %c1 = arith.constant 1 : index
    %71 = memref.load %arg10[%c1] : memref<2xf32, #tpu.memory_space<smem>>
    %72 = vector.broadcast %71 : f32 to vector<8x1xf32>
    %73 = arith.addf %70, %72 : vector<8x1xf32>
    %c0_29 = arith.constant 0 : index
    %c0_30 = arith.constant 0 : index
    %74 = vector.load %arg12[%c0_29, %c0_30] : memref<8x1xf32, #tpu.memory_space<vmem>>, vector<8x1xf32>
    tpu.vector_store %arg12[%c0_29, %c0_30], %73 {strides = array<i32>} : memref<8x1xf32, #tpu.memory_space<vmem>>, vector<8x1xf32>,
    return
  }
  func.func @transform_0(%arg0: i32) -> (i32, i32) {
    %c0_i32 = arith.constant 0 : i32
    %c0_i32_0 = arith.constant 0 : i32
    return %arg0, %c0_i32 : i32, i32
  }
  func.func @transform_1(%arg0: i32) -> (i32, i32) {
    %c0_i32 = arith.constant 0 : i32
    %c0_i32_0 = arith.constant 0 : i32
    return %arg0, %c0_i32 : i32, i32
  }
  func.func @transform_2(%arg0: i32) -> (i32, i32) {
    %c0_i32 = arith.constant 0 : i32
    %c0_i32_0 = arith.constant 0 : i32
    return %arg0, %c0_i32 : i32, i32
  }
  func.func @transform_3(%arg0: i32) -> (i32, i32) {
    %c0_i32 = arith.constant 0 : i32
    %c0_i32_0 = arith.constant 0 : i32
    return %arg0, %c0_i32 : i32, i32
  }
  func.func @transform_4(%arg0: i32) -> (i32, i32) {
    %c0_i32 = arith.constant 0 : i32
    %c0_i32_0 = arith.constant 0 : i32
    %c0_i32_1 = arith.constant 0 : i32
    return %c0_i32, %c0_i32_0 : i32, i32
  }
  func.func @transform_5(%arg0: i32) -> (i32, i32) {
    %c0_i32 = arith.constant 0 : i32
    %c0_i32_0 = arith.constant 0 : i32
    %c0_i32_1 = arith.constant 0 : i32
    return %c0_i32, %c0_i32_0 : i32, i32
  }
  func.func @transform_6(%arg0: i32) -> (i32, i32) {
    %c0_i32 = arith.constant 0 : i32
    %c0_i32_0 = arith.constant 0 : i32
    %c0_i32_1 = arith.constant 0 : i32
    return %c0_i32, %c0_i32_0 : i32, i32
  }
  func.func @transform_7(%arg0: i32) -> (i32, i32) {
    %c0_i32 = arith.constant 0 : i32
    %c0_i32_0 = arith.constant 0 : i32
    %c0_i32_1 = arith.constant 0 : i32
    return %c0_i32, %c0_i32_0 : i32, i32
  }
  func.func @transform_8(%arg0: i32) -> (i32, i32) {
    %c0_i32 = arith.constant 0 : i32
    %c0_i32_0 = arith.constant 0 : i32
    %c0_i32_1 = arith.constant 0 : i32
    return %c0_i32, %c0_i32_0 : i32, i32
  }
  func.func @transform_9(%arg0: i32) -> i32 {
    %c0_i32 = arith.constant 0 : i32
    %c0_i32_0 = arith.constant 0 : i32
    return %c0_i32 : i32
  }
  func.func @transform_10(%arg0: i32) -> (i32, i32) {
    %c0_i32 = arith.constant 0 : i32
    %c0_i32_0 = arith.constant 0 : i32
    return %arg0, %c0_i32 : i32, i32
  }
  func.func @transform_11(%arg0: i32) -> (i32, i32) {
    %c0_i32 = arith.constant 0 : i32
    %c0_i32_0 = arith.constant 0 : i32
    return %arg0, %c0_i32 : i32, i32
  }
}

module attributes {stable_mosaic.version = 11 : i64} {
  func.func @_nae_kernel(%arg0: i32, %arg1: memref<8x1024xbf16, #tpu.memory_space<vmem>>, %arg2: memref<8x2048xbf16, #tpu.memory_space<vmem>>, %arg3: memref<8x1xi32, #tpu.memory_space<vmem>>, %arg4: memref<8x128xbf16, #tpu.memory_space<vmem>>, %arg5: memref<8x128xf32, #tpu.memory_space<vmem>>, %arg6: memref<1024x128xbf16, #tpu.memory_space<vmem>>, %arg7: memref<1x128xf32, #tpu.memory_space<vmem>>, %arg8: memref<2048x128xbf16, #tpu.memory_space<vmem>>, %arg9: memref<1x128xf32, #tpu.memory_space<vmem>>, %arg10: memref<2xf32, #tpu.memory_space<smem>>, %arg11: memref<8x512xbf16, #tpu.memory_space<vmem>>, %arg12: memref<8x1xf32, #tpu.memory_space<vmem>>) attributes {dimension_semantics = [#tpu.dimension_semantics<parallel>], iteration_bounds = array<i64: 1>, scalar_prefetch = 0 : i64, scratch_operands = 0 : i64, tpu.core_type = #tpu.core_type<tc>, window_params = [{transform_indices = @transform_0, window_bounds = array<i64: 8, 1024>}, {transform_indices = @transform_1, window_bounds = array<i64: 8, 2048>}, {transform_indices = @transform_2, window_bounds = array<i64: 8, 1>}, {transform_indices = @transform_3, window_bounds = array<i64: 8, 128>}, {pipeline_mode = #tpu.pipeline_mode<synchronous>, transform_indices = @transform_4, window_bounds = array<i64: 8, 128>}, {pipeline_mode = #tpu.pipeline_mode<synchronous>, transform_indices = @transform_5, window_bounds = array<i64: 1024, 128>}, {pipeline_mode = #tpu.pipeline_mode<synchronous>, transform_indices = @transform_6, window_bounds = array<i64: 1, 128>}, {pipeline_mode = #tpu.pipeline_mode<synchronous>, transform_indices = @transform_7, window_bounds = array<i64: 2048, 128>}, {pipeline_mode = #tpu.pipeline_mode<synchronous>, transform_indices = @transform_8, window_bounds = array<i64: 1, 128>}, {transform_indices = @transform_9, window_bounds = array<i64: 2>}, {transform_indices = @transform_10, window_bounds = array<i64: 8, 512>}, {transform_indices = @transform_11, window_bounds = array<i64: 8, 1>}]} {
    %c0 = arith.constant 0 : index
    %c0_0 = arith.constant 0 : index
    %0 = vector.load %arg1[%c0, %c0_0] : memref<8x1024xbf16, #tpu.memory_space<vmem>>, vector<8x1024xbf16>
    %c0_1 = arith.constant 0 : index
    %c0_2 = arith.constant 0 : index
    %1 = vector.load %arg6[%c0_1, %c0_2] : memref<1024x128xbf16, #tpu.memory_space<vmem>>, vector<1024x128xbf16>
    %cst = arith.constant dense<0.000000e+00> : vector<8x128xf32>
    %2 = tpu.matmul %0, %1, %cst {dimension_numbers = #tpu.dot_dimension_numbers<[1], [0], [0], [1], [0, 0, 1, 1], [], []>} : vector<8x1024xbf16>, vector<1024x128xbf16>, vector<8x128xf32> -> vector<8x128xf32>
    %c0_3 = arith.constant 0 : index
    %c0_4 = arith.constant 0 : index
    %3 = vector.load %arg7[%c0_3, %c0_4] : memref<1x128xf32, #tpu.memory_space<vmem>>, vector<1x128xf32>
    %4 = vector.broadcast %3 : vector<1x128xf32> to vector<8x128xf32>
    %5 = arith.addf %2, %4 : vector<8x128xf32>
    %c0_5 = arith.constant 0 : index
    %c0_6 = arith.constant 0 : index
    %6 = vector.load %arg2[%c0_5, %c0_6] : memref<8x2048xbf16, #tpu.memory_space<vmem>>, vector<8x2048xbf16>
    %c0_7 = arith.constant 0 : index
    %c0_8 = arith.constant 0 : index
    %7 = vector.load %arg8[%c0_7, %c0_8] : memref<2048x128xbf16, #tpu.memory_space<vmem>>, vector<2048x128xbf16>
    %cst_9 = arith.constant dense<0.000000e+00> : vector<8x128xf32>
    %8 = tpu.matmul %6, %7, %cst_9 {dimension_numbers = #tpu.dot_dimension_numbers<[1], [0], [0], [1], [0, 0, 1, 1], [], []>} : vector<8x2048xbf16>, vector<2048x128xbf16>, vector<8x128xf32> -> vector<8x128xf32>
    %c0_10 = arith.constant 0 : index
    %c0_11 = arith.constant 0 : index
    %9 = vector.load %arg9[%c0_10, %c0_11] : memref<1x128xf32, #tpu.memory_space<vmem>>, vector<1x128xf32>
    %10 = vector.broadcast %9 : vector<1x128xf32> to vector<8x128xf32>
    %11 = arith.addf %8, %10 : vector<8x128xf32>
    %c0_12 = arith.constant 0 : index
    %c0_13 = arith.constant 0 : index
    %12 = vector.load %arg3[%c0_12, %c0_13] : memref<8x1xi32, #tpu.memory_space<vmem>>, vector<8x1xi32>
    %c0_14 = arith.constant 0 : index
    %c0_15 = arith.constant 0 : index
    %13 = vector.load %arg5[%c0_14, %c0_15] : memref<8x128xf32, #tpu.memory_space<vmem>>, vector<8x128xf32>
    %c0_i32 = arith.constant 0 : i32
    %14 = vector.broadcast %c0_i32 : i32 to vector<8x1xi32>
    %15 = arith.cmpi eq, %12, %14 : vector<8x1xi32>
    %16 = arith.extui %15 : vector<8x1xi1> to vector<8x1xi32>
    %17 = arith.sitofp %16 : vector<8x1xi32> to vector<8x1xf32>
    %18 = vector.extract_strided_slice %13 {offsets = [0, 0], sizes = [1, 128], strides = [1, 1]} : vector<8x128xf32> to vector<1x128xf32>
    %19 = vector.broadcast %17 : vector<8x1xf32> to vector<8x128xf32>
    %20 = vector.broadcast %18 : vector<1x128xf32> to vector<8x128xf32>
    %21 = arith.mulf %19, %20 : vector<8x128xf32>
    %c1_i32 = arith.constant 1 : i32
    %22 = vector.broadcast %c1_i32 : i32 to vector<8x1xi32>
    %23 = arith.cmpi eq, %12, %22 : vector<8x1xi32>
    %24 = arith.extui %23 : vector<8x1xi1> to vector<8x1xi32>
    %25 = arith.sitofp %24 : vector<8x1xi32> to vector<8x1xf32>
    %26 = vector.extract_strided_slice %13 {offsets = [1, 0], sizes = [1, 128], strides = [1, 1]} : vector<8x128xf32> to vector<1x128xf32>
    %27 = vector.broadcast %25 : vector<8x1xf32> to vector<8x128xf32>
    %28 = vector.broadcast %26 : vector<1x128xf32> to vector<8x128xf32>
    %29 = arith.mulf %27, %28 : vector<8x128xf32>
    %30 = arith.addf %21, %29 : vector<8x128xf32>
    %c0_16 = arith.constant 0 : index
    %c0_17 = arith.constant 0 : index
    %31 = vector.load %arg4[%c0_16, %c0_17] : memref<8x128xbf16, #tpu.memory_space<vmem>>, vector<8x128xbf16>
    %32 = arith.extf %31 : vector<8x128xbf16> to vector<8x128xf32>
    %33 = arith.mulf %5, %5 : vector<8x128xf32>
    %cst_18 = arith.constant dense<0.000000e+00> : vector<8xf32>
    %34 = vector.multi_reduction <add>, %33, %cst_18 [1] : vector<8x128xf32> to vector<8xf32>
    %35 = vector.shape_cast %34 : vector<8xf32> to vector<8x1xf32>
    %36 = arith.mulf %11, %11 : vector<8x128xf32>
    %cst_19 = arith.constant dense<0.000000e+00> : vector<8xf32>
    %37 = vector.multi_reduction <add>, %36, %cst_19 [1] : vector<8x128xf32> to vector<8xf32>
    %38 = vector.shape_cast %37 : vector<8xf32> to vector<8x1xf32>
    %39 = arith.addf %35, %38 : vector<8x1xf32>
    %40 = arith.mulf %30, %30 : vector<8x128xf32>
    %cst_20 = arith.constant dense<0.000000e+00> : vector<8xf32>
    %41 = vector.multi_reduction <add>, %40, %cst_20 [1] : vector<8x128xf32> to vector<8xf32>
    %42 = vector.shape_cast %41 : vector<8xf32> to vector<8x1xf32>
    %43 = arith.addf %39, %42 : vector<8x1xf32>
    %44 = arith.mulf %32, %32 : vector<8x128xf32>
    %cst_21 = arith.constant dense<0.000000e+00> : vector<8xf32>
    %45 = vector.multi_reduction <add>, %44, %cst_21 [1] : vector<8x128xf32> to vector<8xf32>
    %46 = vector.shape_cast %45 : vector<8xf32> to vector<8x1xf32>
    %47 = arith.addf %43, %46 : vector<8x1xf32>
    %cst_22 = arith.constant 1.000000e-24 : f32
    %48 = vector.broadcast %cst_22 : f32 to vector<8x1xf32>
    %49 = arith.maximumf %47, %48 : vector<8x1xf32>
    %50 = math.rsqrt %49 : vector<8x1xf32>
    %51 = arith.mulf %47, %50 : vector<8x1xf32>
    %52 = vector.broadcast %50 : vector<8x1xf32> to vector<8x128xf32>
    %53 = arith.mulf %5, %52 : vector<8x128xf32>
    %54 = arith.truncf %53 : vector<8x128xf32> to vector<8x128xbf16>
    %c0_23 = arith.constant 0 : index
    %c0_24 = arith.constant 0 : index
    %55 = vector.load %arg11[%c0_23, %c0_24] : memref<8x512xbf16, #tpu.memory_space<vmem>>, vector<8x128xbf16>
    tpu.vector_store %arg11[%c0_23, %c0_24], %54 {strides = array<i32>} : memref<8x512xbf16, #tpu.memory_space<vmem>>, vector<8x128xbf16>,
    %56 = vector.broadcast %50 : vector<8x1xf32> to vector<8x128xf32>
    %57 = arith.mulf %11, %56 : vector<8x128xf32>
    %58 = arith.truncf %57 : vector<8x128xf32> to vector<8x128xbf16>
    %c0_25 = arith.constant 0 : index
    %c128 = arith.constant 128 : index
    %59 = vector.load %arg11[%c0_25, %c128] : memref<8x512xbf16, #tpu.memory_space<vmem>>, vector<8x128xbf16>
    tpu.vector_store %arg11[%c0_25, %c128], %58 {strides = array<i32>} : memref<8x512xbf16, #tpu.memory_space<vmem>>, vector<8x128xbf16>,
    %60 = vector.broadcast %50 : vector<8x1xf32> to vector<8x128xf32>
    %61 = arith.mulf %30, %60 : vector<8x128xf32>
    %62 = arith.truncf %61 : vector<8x128xf32> to vector<8x128xbf16>
    %c0_26 = arith.constant 0 : index
    %c256 = arith.constant 256 : index
    %63 = vector.load %arg11[%c0_26, %c256] : memref<8x512xbf16, #tpu.memory_space<vmem>>, vector<8x128xbf16>
    tpu.vector_store %arg11[%c0_26, %c256], %62 {strides = array<i32>} : memref<8x512xbf16, #tpu.memory_space<vmem>>, vector<8x128xbf16>,
    %64 = vector.broadcast %50 : vector<8x1xf32> to vector<8x128xf32>
    %65 = arith.mulf %32, %64 : vector<8x128xf32>
    %66 = arith.truncf %65 : vector<8x128xf32> to vector<8x128xbf16>
    %c0_27 = arith.constant 0 : index
    %c384 = arith.constant 384 : index
    %67 = vector.load %arg11[%c0_27, %c384] : memref<8x512xbf16, #tpu.memory_space<vmem>>, vector<8x128xbf16>
    tpu.vector_store %arg11[%c0_27, %c384], %66 {strides = array<i32>} : memref<8x512xbf16, #tpu.memory_space<vmem>>, vector<8x128xbf16>,
    %c0_28 = arith.constant 0 : index
    %68 = memref.load %arg10[%c0_28] : memref<2xf32, #tpu.memory_space<smem>>
    %69 = vector.broadcast %68 : f32 to vector<8x1xf32>
    %70 = arith.mulf %51, %69 : vector<8x1xf32>
    %c1 = arith.constant 1 : index
    %71 = memref.load %arg10[%c1] : memref<2xf32, #tpu.memory_space<smem>>
    %72 = vector.broadcast %71 : f32 to vector<8x1xf32>
    %73 = arith.addf %70, %72 : vector<8x1xf32>
    %c0_29 = arith.constant 0 : index
    %c0_30 = arith.constant 0 : index
    %74 = vector.load %arg12[%c0_29, %c0_30] : memref<8x1xf32, #tpu.memory_space<vmem>>, vector<8x1xf32>
    tpu.vector_store %arg12[%c0_29, %c0_30], %73 {strides = array<i32>} : memref<8x1xf32, #tpu.memory_space<vmem>>, vector<8x1xf32>,
    return
  }
  func.func @transform_0(%arg0: i32) -> (i32, i32) {
    %c0_i32 = arith.constant 0 : i32
    %c0_i32_0 = arith.constant 0 : i32
    return %arg0, %c0_i32 : i32, i32
  }
  func.func @transform_1(%arg0: i32) -> (i32, i32) {
    %c0_i32 = arith.constant 0 : i32
    %c0_i32_0 = arith.constant 0 : i32
    return %arg0, %c0_i32 : i32, i32
  }
  func.func @transform_2(%arg0: i32) -> (i32, i32) {
    %c0_i32 = arith.constant 0 : i32
    %c0_i32_0 = arith.constant 0 : i32
    return %arg0, %c0_i32 : i32, i32
  }
  func.func @transform_3(%arg0: i32) -> (i32, i32) {
    %c0_i32 = arith.constant 0 : i32
    %c0_i32_0 = arith.constant 0 : i32
    return %arg0, %c0_i32 : i32, i32
  }
  func.func @transform_4(%arg0: i32) -> (i32, i32) {
    %c0_i32 = arith.constant 0 : i32
    %c0_i32_0 = arith.constant 0 : i32
    %c0_i32_1 = arith.constant 0 : i32
    return %c0_i32, %c0_i32_0 : i32, i32
  }
  func.func @transform_5(%arg0: i32) -> (i32, i32) {
    %c0_i32 = arith.constant 0 : i32
    %c0_i32_0 = arith.constant 0 : i32
    %c0_i32_1 = arith.constant 0 : i32
    return %c0_i32, %c0_i32_0 : i32, i32
  }
  func.func @transform_6(%arg0: i32) -> (i32, i32) {
    %c0_i32 = arith.constant 0 : i32
    %c0_i32_0 = arith.constant 0 : i32
    %c0_i32_1 = arith.constant 0 : i32
    return %c0_i32, %c0_i32_0 : i32, i32
  }
  func.func @transform_7(%arg0: i32) -> (i32, i32) {
    %c0_i32 = arith.constant 0 : i32
    %c0_i32_0 = arith.constant 0 : i32
    %c0_i32_1 = arith.constant 0 : i32
    return %c0_i32, %c0_i32_0 : i32, i32
  }
  func.func @transform_8(%arg0: i32) -> (i32, i32) {
    %c0_i32 = arith.constant 0 : i32
    %c0_i32_0 = arith.constant 0 : i32
    %c0_i32_1 = arith.constant 0 : i32
    return %c0_i32, %c0_i32_0 : i32, i32
  }
  func.func @transform_9(%arg0: i32) -> i32 {
    %c0_i32 = arith.constant 0 : i32
    %c0_i32_0 = arith.constant 0 : i32
    return %c0_i32 : i32
  }
  func.func @transform_10(%arg0: i32) -> (i32, i32) {
    %c0_i32 = arith.constant 0 : i32
    %c0_i32_0 = arith.constant 0 : i32
    return %arg0, %c0_i32 : i32, i32
  }
  func.func @transform_11(%arg0: i32) -> (i32, i32) {
    %c0_i32 = arith.constant 0 : i32
    %c0_i32_0 = arith.constant 0 : i32
    return %arg0, %c0_i32 : i32, i32
  }
}

</mosaic_0001>

<bundles_post_ra>
// kernel: tpu_custom_call.1
= control target key start
LH: loop header
LB: loop body
LE: loop exit
PB: predicated region body
PF: predicated region fallthrough
CT: control target
= control target key end

     0   :  { %17 = vsyncpa [#allocation3], 0  ;;  %s3338_s0 = inlined_call_operand.hbm [shape: bf16[8,1024], index: 0, kind: input, shape index: {}]   ;;  %s3339_s1 = inlined_call_operand.hbm [shape: bf16[8,2048], index: 1, kind: input, shape index: {}]   ;;  %s3340_s2 = inlined_call_operand.vmem [shape: s32[8,1], index: 2, kind: input, shape index: {}]   ;;  %s3341_s3 = inlined_call_operand.vmem [shape: bf16[8,128], index: 3, kind: input, shape index: {}]   ;;  %s3342_s4 = inlined_call_operand.vmem [shape: f32[8,128], index: 4, kind: input, shape index: {}]   ;;  %s3343_s5 = inlined_call_operand.hbm [shape: bf16[1024,128], index: 5, kind: input, shape index: {}]   ;;  %s3344_s6 = inlined_call_operand.vmem [shape: f32[1,128], index: 6, kind: input, shape index: {}]   ;;  %s3345_s7 = inlined_call_operand.hbm [shape: bf16[2048,128], index: 7, kind: input, shape index: {}]   ;;  %s3346_s8 = inlined_call_operand.vmem [shape: f32[1,128], index: 8, kind: input, shape index: {}]   ;;  %s3347_s9 = inlined_call_operand.vmem [shape: f32[2], index: 9, kind: input, shape index: {}]   ;;  %s3348_s10 = inlined_call_operand.hbm [shape: bf16[8,512], index: 10, kind: output, shape index: {0}]   ;;  %s3349_s11 = inlined_call_operand.vmem [shape: f32[8,1], index: 11, kind: output, shape index: {1}]  }
   0x1   :  { %18 = vsyncpa [#allocation7], 0 }
   0x2   :  { %19 = vsyncpa [#allocation10], 0 }
   0x3   :  { %20 = vsyncpa [#allocation5], 0 }
   0x4   :  { %21 = vsyncpa [#allocation4], 0  ;;  %s3182_s17 = smov [#allocation6]   ;;  %s3183_s19 = smov [#allocation2]  }
   0x5   :  { %s38_s18 = sshll.u32 %s3182_s17, 4  ;;  %s28_s20 = sshll.u32 %s3183_s19, 4  ;;  %s39_s18 = int_to_ptr.vmem [resolvable:$true] %s38_s18  ;;  %s29_s20 = int_to_ptr.vmem [resolvable:$true] %s28_s20 }
   0x6   :  { %s3050_s23 = scalar_lea.hbm %s3339_s1, 1024 }
   0x7   :  { %p3051_p0 = scmp.ne.s32.totalorder %s3339_s1, %s3050_s23  ;;  %p3054_p1 = scmp.lt.u32.totalorder %s3050_s23, %s3339_s1 }
   0x9   :  { %p3056_p2 = pnand %p3054_p1, %p3051_p0 }
   0xb   :  { %3059 = shalt.err (!%p3056_p2)
}
   0xc   :  { %s3060_s28 = scalar_lea.vmem %s39_s18, 1024  ;;  %p3065_p4 = scmp.lt.s32.totalorder %s39_s18, %s39_s18 }
   0xd   :  { %p3061_p3 = scmp.ne.s32.totalorder %s39_s18, %s3060_s28  ;;  %p3066_p5 = scmp.lt.s32.totalorder %s3060_s28, %s3060_s28 }
   0xf   :  { %p3067_p6 = por %p3066_p5, %p3065_p4 }
  0x11   :  { %p3068_p7 = pnand %p3067_p6, %p3061_p3 }
  0x13   :  { %3071 = shalt.err (!%p3068_p7)
}
  0x14   :  { %41 = dma.hbm_to_vmem [thread:$0]  %s3339_s1, 1024, %s39_s18, [#allocation7]  }
  0x15   :  { %s3072_s14 = scalar_lea.hbm %s3338_s0, 512 }
  0x16   :  { %p3073_p8 = scmp.ne.s32.totalorder %s3338_s0, %s3072_s14  ;;  %p3076_p9 = scmp.lt.u32.totalorder %s3072_s14, %s3338_s0 }
  0x18   :  { %p3078_p10 = pnand %p3076_p9, %p3073_p8 }
  0x1a   :  { %3081 = shalt.err (!%p3078_p10)
}
  0x1b   :  { %s3082_s21 = scalar_lea.vmem %s29_s20, 512  ;;  %p3087_p12 = scmp.lt.s32.totalorder %s29_s20, %s29_s20 }
  0x1c   :  { %p3083_p11 = scmp.ne.s32.totalorder %s29_s20, %s3082_s21  ;;  %p3088_p13 = scmp.lt.s32.totalorder %s3082_s21, %s3082_s21 }
  0x1e   :  { %p3089_p0 = por %p3088_p13, %p3087_p12 }
  0x20   :  { %p3090_p1 = pnand %p3089_p0, %p3083_p11 }
  0x22   :  { %3093 = shalt.err (!%p3090_p1)
}
  0x23   :  { %31 = dma.hbm_to_vmem [thread:$0]  %s3338_s0, 512, %s29_s20, [#allocation3]  }
  0x24   :  { %s3184_s22 = smov [#allocation8]   ;;  %s3094_s26 = scalar_lea.hbm %s3343_s5, 8192 }
  0x25   :  { %s53_s23 = sshll.u32 %s3184_s22, 4  ;;  %p3095_p2 = scmp.ne.s32.totalorder %s3343_s5, %s3094_s26  ;;  %s54_s23 = int_to_ptr.vmem [resolvable:$true] %s53_s23 }
  0x26   :  { %p3098_p3 = scmp.lt.u32.totalorder %s3094_s26, %s3343_s5 }
  0x28   :  { %p3100_p4 = pnand %p3098_p3, %p3095_p2 }
  0x2a   :  { %3103 = shalt.err (!%p3100_p4)
}
  0x2b   :  { %s3104_s12 = scalar_lea.vmem %s54_s23, 8192  ;;  %p3109_p6 = scmp.lt.s32.totalorder %s54_s23, %s54_s23 }
  0x2c   :  { %p3105_p5 = scmp.ne.s32.totalorder %s54_s23, %s3104_s12  ;;  %p3110_p7 = scmp.lt.s32.totalorder %s3104_s12, %s3104_s12 }
  0x2e   :  { %p3111_p8 = por %p3110_p7, %p3109_p6 }
  0x30   :  { %p3112_p9 = pnand %p3111_p8, %p3105_p5 }
  0x32   :  { %3115 = shalt.err (!%p3112_p9)
}
  0x33   :  { %s3185_s0 = smov 64   ;;  %s3186_s20 = smov 4  }
  0x34   :  { %59 = dma.hbm_to_vmem [thread:$0]  %s3343_s5, 8192, %s54_s23, [#allocation7], %s3185_s0, %s3185_s0, %s3186_s20  }
  0x35   :  { %s3187_s15 = smov [#allocation9]   ;;  %s82_s21 = sshll.u32 %s3347_s9, 4  ;;  %s83_s21 = int_to_ptr.vmem [resolvable:$true] %s82_s21 }
  0x36   :  { %s67_s16 = sshll.u32 %s3187_s15, 4  ;;  %s3116_s22 = scalar_lea.hbm %s3345_s7, 16384  ;;  %s68_s16 = int_to_ptr.vmem [resolvable:$true] %s67_s16 }
  0x37   :  { %p3117_p10 = scmp.ne.s32.totalorder %s3345_s7, %s3116_s22  ;;  %p3120_p11 = scmp.lt.u32.totalorder %s3116_s22, %s3345_s7 }
  0x39   :  { %p3122_p12 = pnand %p3120_p11, %p3117_p10 }
  0x3b   :  { %3125 = shalt.err (!%p3122_p12)
}
  0x3c   :  { %s3126_s5 = scalar_lea.vmem %s68_s16, 16384  ;;  %p3131_p0 = scmp.lt.s32.totalorder %s68_s16, %s68_s16 }
  0x3d   :  { %p3127_p13 = scmp.ne.s32.totalorder %s68_s16, %s3126_s5  ;;  %p3132_p1 = scmp.lt.s32.totalorder %s3126_s5, %s3126_s5 }
  0x3f   :  { %p3133_p2 = por %p3132_p1, %p3131_p0 }
  0x41   :  { %p3134_p3 = pnand %p3133_p2, %p3127_p13 }
  0x43   :  { %3137 = shalt.err (!%p3134_p3)
}
  0x44   :  { %73 = dma.hbm_to_vmem [thread:$0]  %s3345_s7, 16384, %s68_s16, [#allocation10], %s3185_s0, %s3185_s0, %s3186_s20  }
  0x45   :  { %s3138_s28 = scalar_lea.vmem %s83_s21, 16  ;;  %p3143_p5 = scmp.lt.s32.totalorder %s83_s21, %s83_s21 }
  0x46   :  { %p3139_p4 = scmp.ne.s32.totalorder %s83_s21, %s3138_s28  ;;  %p3144_p6 = scmp.lt.s32.totalorder %s3138_s28, %s3138_s28 }
  0x48   :  { %p3145_p7 = por %p3144_p6, %p3143_p5 }
  0x4a   :  { %p3146_p8 = pnand %p3145_p7, %p3139_p4 }
  0x4c   :  { %3149 = shalt.err (!%p3146_p8)
}
  0x4d   :  { %s3188_s29 = smov [#allocation11]  }
  0x4e   :  { %85 = dma.vmem_to_smem %s83_s21, 16, %s3188_s29, [#allocation5]  }
  0x4f   :  { %3172 = dma.done.wait [#allocation3], 512  }
  0x50   :  { %3173 = vsyncadd [#allocation3], 4294966784 }
  0x51   :  { %3174 = dma.done.wait [#allocation7], 9216  }
  0x52   :  { %3175 = vsyncadd [#allocation7], 4294958080 }
  0x53   :  { %3176 = dma.done.wait [#allocation10], 16384  }
  0x54   :  { %3177 = vsyncadd [#allocation10], 4294950912 }
  0x55   :  { %3178 = dma.done.wait [#allocation5], 16  }
  0x56   :  { %3179 = vsyncadd [#allocation5], 4294967280 }
  0x57   :  { %101 = sfence }
  0x58   :  { %v2832_v0 = vld [vmem:[#allocation8 + $0x40] sm:$0xff]   ;;  %v2836_v4 = vld [vmem:[#allocation8 + $0x48] sm:$0xff]   ;;  %v2840_v8 = vld [vmem:[#allocation8 + $0x50] sm:$0xff]   ;;  %s2290_s14 = sld [smem:[#allocation11]]  ;;  %s2540_s15 = sld [smem:[#allocation11 + $0x1]]  ;;  %vm2296_vm2 = vcmask 7168  }
  0x59   :  { %v2833_v1 = vld [vmem:[#allocation8 + $0xc0] sm:$0xff]   ;;  %2552 = vmatprep.subr.bf16.mxu0 %v2832_v0  ;;  %v2837_v5 = vld [vmem:[#allocation8 + $0xc8] sm:$0xff]   ;;  %v2841_v9 = vld [vmem:[#allocation8 + $0xd0] sm:$0xff]  }
  0x5a   :  { %v2834_v2 = vld [vmem:[#allocation8] sm:$0xff]   ;;  %2574 = vmatprep.subr.bf16.mxu1 %v2833_v1  ;;  %v2838_v6 = vld [vmem:[#allocation8 + $0x8] sm:$0xff]   ;;  %v2842_v10 = vld [vmem:[#allocation8 + $0x10] sm:$0xff]  }
  0x5b   :  { %v2835_v3 = vld [vmem:[#allocation8 + $0x80] sm:$0xff]   ;;  %2553 = vmatpush3.bf16.msra.mxu0 %v2834_v2  ;;  %v2839_v7 = vld [vmem:[#allocation8 + $0x88] sm:$0xff]   ;;  %v2843_v11 = vld [vmem:[#allocation8 + $0x90] sm:$0xff]  }
  0x5c   :  { %2575 = vmatpush3.bf16.msra.mxu1 %v2835_v3  ;;  %2554 = vmatprep.subr.bf16.mxu0 %v2836_v4  ;;  %v2844_v12 = vld [vmem:[#allocation8 + $0x58] sm:$0xff]   ;;  %v2848_v16 = vld [vmem:[#allocation8 + $0x60] sm:$0xff]   ;;  %v2852_v20 = vld [vmem:[#allocation8 + $0x68] sm:$0xff]  }
  0x5d   :  { %2576 = vmatprep.subr.bf16.mxu1 %v2837_v5  ;;  %v2845_v13 = vld [vmem:[#allocation8 + $0xd8] sm:$0xff]   ;;  %v2849_v17 = vld [vmem:[#allocation8 + $0xe0] sm:$0xff]   ;;  %v2853_v21 = vld [vmem:[#allocation8 + $0xe8] sm:$0xff]  }
  0x5e   :  { %v2846_v14 = vld [vmem:[#allocation8 + $0x18] sm:$0xff]   ;;  %v2850_v18 = vld [vmem:[#allocation8 + $0x20] sm:$0xff]   ;;  %v2854_v22 = vld [vmem:[#allocation8 + $0x28] sm:$0xff]  }
  0x5f   :  { %2555 = vmatpush3.bf16.msra.mxu0 %v2838_v6  ;;  %v2847_v15 = vld [vmem:[#allocation8 + $0x98] sm:$0xff]   ;;  %v2851_v19 = vld [vmem:[#allocation8 + $0xa0] sm:$0xff]   ;;  %v2855_v23 = vld [vmem:[#allocation8 + $0xa8] sm:$0xff]  }
  0x60   :  { %2577 = vmatpush3.bf16.msra.mxu1 %v2839_v7  ;;  %2556 = vmatprep.subr.bf16.mxu0 %v2840_v8  ;;  %v2856_v24 = vld [vmem:[#allocation8 + $0x70] sm:$0xff]   ;;  %v2860_v28 = vld [vmem:[#allocation8 + $0x78] sm:$0xff]   ;;  %v103_v32 = vld [vmem:[#allocation2] sm:$0xff] }
  0x61   :  { %2578 = vmatprep.subr.bf16.mxu1 %v2841_v9  ;;  %v2857_v25 = vld [vmem:[#allocation8 + $0xf0] sm:$0xff]   ;;  %v2861_v29 = vld [vmem:[#allocation8 + $0xf8] sm:$0xff]   ;;  %v104_v33 = vld [vmem:[#allocation2 + $0x8] sm:$0xff]  ;;  %v2321_v34 = vcombine.low %v103_v32, %v103_v32  ;;  %v2322_v35 = vcombine.high %v103_v32, %v103_v32 }
  0x62   :  { %v2858_v26 = vld [vmem:[#allocation8 + $0x30] sm:$0xff]   ;;  %v2862_v30 = vld [vmem:[#allocation8 + $0x38] sm:$0xff]   ;;  %v2323_v36 = vcombine.low %v104_v33, %v104_v33  ;;  %v2324_v37 = vcombine.high %v104_v33, %v104_v33  ;;  %v2868_v38 = vld [vmem:[#allocation8 + $0x140] sm:$0xff]  }
  0x63   :  { %2557 = vmatpush3.bf16.msra.mxu0 %v2842_v10  ;;  %v2859_v27 = vld [vmem:[#allocation8 + $0xb0] sm:$0xff]   ;;  %v2863_v31 = vld [vmem:[#allocation8 + $0xb8] sm:$0xff]   ;;  %v2869_v39 = vld [vmem:[#allocation8 + $0x1c0] sm:$0xff]   ;;  %686 = vmatprep.mubr.bf16.mxu0 %v2322_v35 }
  0x64   :  { %2579 = vmatpush3.bf16.msra.mxu1 %v2843_v11  ;;  %2558 = vmatprep.subr.bf16.mxu0 %v2844_v12  ;;  %v2870_v40 = vld [vmem:[#allocation8 + $0x100] sm:$0xff]   ;;  %v2872_v42 = vld [vmem:[#allocation8 + $0x148] sm:$0xff]   ;;  %v2876_v46 = vld [vmem:[#allocation8 + $0x150] sm:$0xff]  }
  0x65   :  { %2580 = vmatprep.subr.bf16.mxu1 %v2845_v13  ;;  %726 = vmatprep.mubr.bf16.mxu1 %v2324_v37  ;;  %v2871_v41 = vld [vmem:[#allocation8 + $0x180] sm:$0xff]   ;;  %v2873_v43 = vld [vmem:[#allocation8 + $0x1c8] sm:$0xff]   ;;  %v2877_v47 = vld [vmem:[#allocation8 + $0x1d0] sm:$0xff]  }
  0x66   :  { %v2874_v44 = vld [vmem:[#allocation8 + $0x108] sm:$0xff]   ;;  %v2878_v48 = vld [vmem:[#allocation8 + $0x110] sm:$0xff]   ;;  %v2880_v50 = vld [vmem:[#allocation8 + $0x158] sm:$0xff]  }
  0x67   :  { %2559 = vmatpush3.bf16.msra.mxu0 %v2846_v14  ;;  %v2875_v45 = vld [vmem:[#allocation8 + $0x188] sm:$0xff]   ;;  %v2879_v49 = vld [vmem:[#allocation8 + $0x190] sm:$0xff]   ;;  %v2881_v51 = vld [vmem:[#allocation8 + $0x1d8] sm:$0xff]  }
  0x68   :  { %2581 = vmatpush3.bf16.msra.mxu1 %v2847_v15  ;;  %2560 = vmatprep.subr.bf16.mxu0 %v2848_v16  ;;  %v2882_v52 = vld [vmem:[#allocation8 + $0x118] sm:$0xff]   ;;  %v2884_v54 = vld [vmem:[#allocation8 + $0x160] sm:$0xff]   ;;  %v2888_v58 = vld [vmem:[#allocation8 + $0x168] sm:$0xff]  }
  0x69   :  { %2582 = vmatprep.subr.bf16.mxu1 %v2849_v17  ;;  %v2883_v53 = vld [vmem:[#allocation8 + $0x198] sm:$0xff]   ;;  %v2885_v55 = vld [vmem:[#allocation8 + $0x1e0] sm:$0xff]   ;;  %v2889_v59 = vld [vmem:[#allocation8 + $0x1e8] sm:$0xff]  }
  0x6a   :  { %v2886_v56 = vld [vmem:[#allocation8 + $0x120] sm:$0xff]   ;;  %v2890_v60 = vld [vmem:[#allocation8 + $0x128] sm:$0xff]   ;;  %v2892_v62 = vld [vmem:[#allocation8 + $0x170] sm:$0xff]  }
  0x6b   :  { %2561 = vmatpush3.bf16.msra.mxu0 %v2850_v18  ;;  %v2887_v57 = vld [vmem:[#allocation8 + $0x1a0] sm:$0xff]   ;;  %v2891_v61 = vld [vmem:[#allocation8 + $0x1a8] sm:$0xff]   ;;  %v2893_v63 = vld [vmem:[#allocation8 + $0x1f0] sm:$0xff]  }
  0x6c   :  { %2583 = vmatpush3.bf16.msra.mxu1 %v2851_v19  ;;  %2562 = vmatprep.subr.bf16.mxu0 %v2852_v20  ;;  %v2894_v0 = vld [vmem:[#allocation8 + $0x130] sm:$0xff]   ;;  %v2896_v2 = vld [vmem:[#allocation8 + $0x178] sm:$0xff]   ;;  %v2904_v12 = vld [vmem:[#allocation9 + $0x40] sm:$0xff]  }
  0x6d   :  { %2584 = vmatprep.subr.bf16.mxu1 %v2853_v21  ;;  %v2895_v1 = vld [vmem:[#allocation8 + $0x1b0] sm:$0xff]   ;;  %v2897_v3 = vld [vmem:[#allocation8 + $0x1f8] sm:$0xff]   ;;  %v2905_v13 = vld [vmem:[#allocation9 + $0xc0] sm:$0xff]  }
  0x6e   :  { %v2898_v4 = vld [vmem:[#allocation8 + $0x138] sm:$0xff]   ;;  %v105_v6 = vld [vmem:[#allocation2 + $0x10] sm:$0xff]  ;;  %v2906_v14 = vld [vmem:[#allocation9] sm:$0xff]  }
  0x6f   :  { %2563 = vmatpush3.bf16.msra.mxu0 %v2854_v22  ;;  %v2899_v5 = vld [vmem:[#allocation8 + $0x1b8] sm:$0xff]   ;;  %v2325_v7 = vcombine.low %v105_v6, %v105_v6  ;;  %v2326_v8 = vcombine.high %v105_v6, %v105_v6  ;;  %v2907_v15 = vld [vmem:[#allocation9 + $0x80] sm:$0xff]   ;;  %v2908_v16 = vld [vmem:[#allocation9 + $0x48] sm:$0xff]  }
  0x70   :  { %2585 = vmatpush3.bf16.msra.mxu1 %v2855_v23  ;;  %2564 = vmatprep.subr.bf16.mxu0 %v2856_v24  ;;  %v106_v9 = vld [vmem:[#allocation2 + $0x18] sm:$0xff]  ;;  %v2909_v17 = vld [vmem:[#allocation9 + $0xc8] sm:$0xff]   ;;  %v2912_v20 = vld [vmem:[#allocation9 + $0x50] sm:$0xff]  }
  0x71   :  { %2586 = vmatprep.subr.bf16.mxu1 %v2857_v25  ;;  %v2327_v10 = vcombine.low %v106_v9, %v106_v9  ;;  %v2328_v11 = vcombine.high %v106_v9, %v106_v9  ;;  %v2910_v18 = vld [vmem:[#allocation9 + $0x8] sm:$0xff]   ;;  %v2913_v21 = vld [vmem:[#allocation9 + $0xd0] sm:$0xff]   ;;  %v2916_v24 = vld [vmem:[#allocation9 + $0x58] sm:$0xff]  }
  0x72   :  { %v2911_v19 = vld [vmem:[#allocation9 + $0x88] sm:$0xff]   ;;  %v2914_v22 = vld [vmem:[#allocation9 + $0x10] sm:$0xff]   ;;  %v2917_v25 = vld [vmem:[#allocation9 + $0xd8] sm:$0xff]  }
  0x73   :  { %2565 = vmatpush3.bf16.msra.mxu0 %v2858_v26  ;;  %v2915_v23 = vld [vmem:[#allocation9 + $0x90] sm:$0xff]   ;;  %v2918_v26 = vld [vmem:[#allocation9 + $0x18] sm:$0xff]   ;;  %v2924_v32 = vld [vmem:[#allocation9 + $0x68] sm:$0xff]  }
  0x74   :  { %2587 = vmatpush3.bf16.msra.mxu1 %v2859_v27  ;;  %2566 = vmatprep.subr.bf16.mxu0 %v2860_v28  ;;  %v2919_v27 = vld [vmem:[#allocation9 + $0x98] sm:$0xff]   ;;  %v2920_v28 = vld [vmem:[#allocation9 + $0x60] sm:$0xff]   ;;  %v2925_v33 = vld [vmem:[#allocation9 + $0xe8] sm:$0xff]  }
  0x75   :  { %2588 = vmatprep.subr.bf16.mxu1 %v2861_v29  ;;  %v2921_v29 = vld [vmem:[#allocation9 + $0xe0] sm:$0xff]   ;;  %v2927_v35 = vld [vmem:[#allocation9 + $0xa8] sm:$0xff]   ;;  %v2929_v37 = vld [vmem:[#allocation9 + $0xf0] sm:$0xff]  }
  0x76   :  { %v2960_v6 = vld [vmem:[#allocation9 + $0x168] sm:$0xff]  }
  0x77   :  { %2567 = vmatpush3.bf16.msra.mxu0 %v2862_v30  ;;  %v2922_v30 = vld [vmem:[#allocation9 + $0x20] sm:$0xff]   ;;  %v2963_v9 = vld [vmem:[#allocation9 + $0x1a8] sm:$0xff]  }
  0x78   :  { %2589 = vmatpush3.bf16.msra.mxu1 %v2863_v31  ;;  %2596 = vmatprep.subr.bf16.mxu0 %v2868_v38  ;;  %v2923_v31 = vld [vmem:[#allocation9 + $0xa0] sm:$0xff]   ;;  %v2930_v38 = vld [vmem:[#allocation9 + $0x30] sm:$0xff]  }
  0x79   :  { %2618 = vmatprep.subr.bf16.mxu1 %v2869_v39  ;;  %v2931_v39 = vld [vmem:[#allocation9 + $0xb0] sm:$0xff]  }
  0x7a   :  { %687 = vmatmul.mubr.bf16.vlgmr.msra.gmra.mrb[0].mxu0 %v2321_v34  ;;  %v2926_v34 = vld [vmem:[#allocation9 + $0x28] sm:$0xff]  }
  0x7b   :  { %727 = vmatmul.mubr.bf16.vlgmr.msra.gmra.mrb[0].mxu1 %v2323_v36  ;;  %2597 = vmatpush3.bf16.msra.mxu0 %v2870_v40  ;;  %v2928_v36 = vld [vmem:[#allocation9 + $0x70] sm:$0xff]   ;;  %v2932_v40 = vld [vmem:[#allocation9 + $0x78] sm:$0xff]  }
  0x7c   :  { %2619 = vmatpush3.bf16.msra.mxu1 %v2871_v41  ;;  %2598 = vmatprep.subr.bf16.mxu0 %v2872_v42  ;;  %v2933_v41 = vld [vmem:[#allocation9 + $0xf8] sm:$0xff]  }
  0x7d   :  { %2620 = vmatprep.subr.bf16.mxu1 %v2873_v43  ;;  %766 = vmatprep.mubr.bf16.mxu0 %v2326_v8  ;;  %v2934_v42 = vld [vmem:[#allocation9 + $0x38] sm:$0xff]   ;;  %v2962_v8 = vld [vmem:[#allocation9 + $0x128] sm:$0xff]  }
  0x7e   :  { %806 = vmatprep.mubr.bf16.mxu1 %v2328_v11  ;;  %v2935_v43 = vld [vmem:[#allocation9 + $0xb8] sm:$0xff]   ;;  %v2965_v11 = vld [vmem:[#allocation9 + $0x1f0] sm:$0xff]  }
  0x7f   :  { %2599 = vmatpush3.bf16.msra.mxu0 %v2874_v44  ;;  %v814_v44 = vld [vmem:[#allocation6] sm:$0xff] }
  0x80   :  { %2621 = vmatpush3.bf16.msra.mxu1 %v2875_v45  ;;  %2600 = vmatprep.subr.bf16.mxu0 %v2876_v46  ;;  %v815_v45 = vld [vmem:[#allocation6 + $0x8] sm:$0xff]  ;;  %v2394_v46 = vcombine.low %v814_v44, %v814_v44 }
  0x81   :  { %2622 = vmatprep.subr.bf16.mxu1 %v2877_v47  ;;  %v2395_v47 = vcombine.high %v814_v44, %v814_v44  ;;  %v2995_v44 = vld [vmem:[#allocation9 + $0x2a0] sm:$0xff]  }
  0x83   :  { %2601 = vmatpush3.bf16.msra.mxu0 %v2878_v48  ;;  %v2396_v48 = vcombine.low %v815_v45, %v815_v45 }
  0x84   :  { %2623 = vmatpush3.bf16.msra.mxu1 %v2879_v49  ;;  %2602 = vmatprep.subr.bf16.mxu0 %v2880_v50  ;;  %v2397_v49 = vcombine.high %v815_v45, %v815_v45  ;;  %v2940_v50 = vld [vmem:[#allocation9 + $0x140] sm:$0xff]   ;;  %v2996_v45 = vld [vmem:[#allocation9 + $0x268] sm:$0xff]  }
  0x85   :  { %2624 = vmatprep.subr.bf16.mxu1 %v2881_v51  ;;  %v2941_v51 = vld [vmem:[#allocation9 + $0x1c0] sm:$0xff]  }
  0x87   :  { %2603 = vmatpush3.bf16.msra.mxu0 %v2882_v52  ;;  %v2942_v52 = vld [vmem:[#allocation9 + $0x100] sm:$0xff]  }
  0x88   :  { %2625 = vmatpush3.bf16.msra.mxu1 %v2883_v53  ;;  %2604 = vmatprep.subr.bf16.mxu0 %v2884_v54  ;;  %v2943_v53 = vld [vmem:[#allocation9 + $0x180] sm:$0xff]   ;;  %v2944_v54 = vld [vmem:[#allocation9 + $0x148] sm:$0xff]  }
  0x89   :  { %2626 = vmatprep.subr.bf16.mxu1 %v2885_v55  ;;  %v2945_v55 = vld [vmem:[#allocation9 + $0x1c8] sm:$0xff]  }
  0x8b   :  { %2605 = vmatpush3.bf16.msra.mxu0 %v2886_v56  ;;  %v2946_v56 = vld [vmem:[#allocation9 + $0x108] sm:$0xff]  }
  0x8c   :  { %2627 = vmatpush3.bf16.msra.mxu1 %v2887_v57  ;;  %2606 = vmatprep.subr.bf16.mxu0 %v2888_v58  ;;  %v2947_v57 = vld [vmem:[#allocation9 + $0x188] sm:$0xff]   ;;  %v2948_v58 = vld [vmem:[#allocation9 + $0x150] sm:$0xff]  }
  0x8d   :  { %2628 = vmatprep.subr.bf16.mxu1 %v2889_v59  ;;  %v2949_v59 = vld [vmem:[#allocation9 + $0x1d0] sm:$0xff]  }
  0x8f   :  { %2607 = vmatpush3.bf16.msra.mxu0 %v2890_v60  ;;  %v2950_v60 = vld [vmem:[#allocation9 + $0x110] sm:$0xff]  }
  0x90   :  { %2629 = vmatpush3.bf16.msra.mxu1 %v2891_v61  ;;  %2608 = vmatprep.subr.bf16.mxu0 %v2892_v62  ;;  %v2951_v61 = vld [vmem:[#allocation9 + $0x190] sm:$0xff]   ;;  %v2952_v62 = vld [vmem:[#allocation9 + $0x158] sm:$0xff]  }
  0x91   :  { %2630 = vmatprep.subr.bf16.mxu1 %v2893_v63  ;;  %v2953_v63 = vld [vmem:[#allocation9 + $0x1d8] sm:$0xff]  }
  0x93   :  { %2609 = vmatpush3.bf16.msra.mxu0 %v2894_v0  ;;  %v2954_v0 = vld [vmem:[#allocation9 + $0x118] sm:$0xff]  }
  0x94   :  { %2631 = vmatpush3.bf16.msra.mxu1 %v2895_v1  ;;  %2610 = vmatprep.subr.bf16.mxu0 %v2896_v2  ;;  %v2955_v1 = vld [vmem:[#allocation9 + $0x198] sm:$0xff]   ;;  %v2956_v2 = vld [vmem:[#allocation9 + $0x160] sm:$0xff]  }
  0x95   :  { %2632 = vmatprep.subr.bf16.mxu1 %v2897_v3  ;;  %v2957_v3 = vld [vmem:[#allocation9 + $0x1e0] sm:$0xff]  }
  0x97   :  { %2611 = vmatpush3.bf16.msra.mxu0 %v2898_v4  ;;  %v2958_v4 = vld [vmem:[#allocation9 + $0x120] sm:$0xff]  }
  0x98   :  { %2633 = vmatpush3.bf16.msra.mxu1 %v2899_v5  ;;  %2640 = vmatprep.subr.bf16.mxu0 %v2904_v12  ;;  %v2959_v5 = vld [vmem:[#allocation9 + $0x1a0] sm:$0xff]   ;;  %v2966_v12 = vld [vmem:[#allocation9 + $0x130] sm:$0xff]  }
  0x99   :  { %2662 = vmatprep.subr.bf16.mxu1 %v2905_v13  ;;  %v2967_v13 = vld [vmem:[#allocation9 + $0x1b0] sm:$0xff]  }
  0x9a   :  { %767 = vmatmul.mubr.bf16.vlgmr.msra.gmra.mrb[4].mxu0 %v2325_v7  ;;  %v2961_v7 = vld [vmem:[#allocation9 + $0x1e8] sm:$0xff]  }
  0x9b   :  { %807 = vmatmul.mubr.bf16.vlgmr.msra.gmra.mrb[4].mxu1 %v2327_v10  ;;  %2641 = vmatpush3.bf16.msra.mxu0 %v2906_v14  ;;  %v2964_v10 = vld [vmem:[#allocation9 + $0x170] sm:$0xff]   ;;  %v2968_v14 = vld [vmem:[#allocation9 + $0x178] sm:$0xff]  }
  0x9c   :  { %2663 = vmatpush3.bf16.msra.mxu1 %v2907_v15  ;;  %2642 = vmatprep.subr.bf16.mxu0 %v2908_v16  ;;  %v3189_v15 = vmov 0   ;;  %v2969_v16 = vld [vmem:[#allocation9 + $0x1f8] sm:$0xff]  }
  0x9d   :  { %2664 = vmatprep.subr.bf16.mxu1 %v2909_v17  ;;  %1941 = vmatprep.mubr.bf16.mxu0 %v2395_v47  ;;  %v2970_v17 = vld [vmem:[#allocation9 + $0x138] sm:$0xff]   ;;  %v2998_v47 = vld [vmem:[#allocation9 + $0x228] sm:$0xff]  }
  0x9e   :  { %1981 = vmatprep.mubr.bf16.mxu1 %v2397_v49  ;;  %2826 = vset.pattern.permute.xlu0 %v3189_v15  ;;  %v3000_v49 = vld [vmem:[#allocation9 + $0x270] sm:$0xff]   ;;  %v3028_v15 = vld [vmem:[#allocation9 + $0x360] sm:$0xff]  }
  0x9f   :  { %2643 = vmatpush3.bf16.msra.mxu0 %v2910_v18  ;;  %v2971_v18 = vld [vmem:[#allocation9 + $0x1b8] sm:$0xff]  }
  0xa0   :  { %2665 = vmatpush3.bf16.msra.mxu1 %v2911_v19  ;;  %2644 = vmatprep.subr.bf16.mxu0 %v2912_v20  ;;  %v816_v19 = vld [vmem:[#allocation6 + $0x10] sm:$0xff]  ;;  %v817_v20 = vld [vmem:[#allocation6 + $0x18] sm:$0xff] }
  0xa1   :  { %2666 = vmatprep.subr.bf16.mxu1 %v2913_v21  ;;  %v2398_v21 = vcombine.low %v816_v19, %v816_v19 }
  0xa3   :  { %2645 = vmatpush3.bf16.msra.mxu0 %v2914_v22  ;;  %v2399_v22 = vcombine.high %v816_v19, %v816_v19  ;;  %v3032_v19 = vld [vmem:[#allocation9 + $0x368] sm:$0xff]  }
  0xa4   :  { %2667 = vmatpush3.bf16.msra.mxu1 %v2915_v23  ;;  %2646 = vmatprep.subr.bf16.mxu0 %v2916_v24  ;;  %v2400_v23 = vcombine.low %v817_v20, %v817_v20  ;;  %v2976_v24 = vld [vmem:[#allocation9 + $0x240] sm:$0xff]  }
  0xa5   :  { %2668 = vmatprep.subr.bf16.mxu1 %v2917_v25  ;;  %v2401_v25 = vcombine.high %v817_v20, %v817_v20  ;;  %v3033_v20 = vld [vmem:[#allocation9 + $0x3e8] sm:$0xff]  }
  0xa7   :  { %2647 = vmatpush3.bf16.msra.mxu0 %v2918_v26  ;;  %v2977_v26 = vld [vmem:[#allocation9 + $0x2c0] sm:$0xff]  }
  0xa8   :  { %2669 = vmatpush3.bf16.msra.mxu1 %v2919_v27  ;;  %2648 = vmatprep.subr.bf16.mxu0 %v2920_v28  ;;  %v2978_v27 = vld [vmem:[#allocation9 + $0x200] sm:$0xff]  }
  0xa9   :  { %2670 = vmatprep.subr.bf16.mxu1 %v2921_v29  ;;  %v2979_v28 = vld [vmem:[#allocation9 + $0x280] sm:$0xff]   ;;  %v2980_v29 = vld [vmem:[#allocation9 + $0x248] sm:$0xff]  }
  0xab   :  { %2649 = vmatpush3.bf16.msra.mxu0 %v2922_v30  ;;  %v2981_v30 = vld [vmem:[#allocation9 + $0x2c8] sm:$0xff]  }
  0xac   :  { %2671 = vmatpush3.bf16.msra.mxu1 %v2923_v31  ;;  %2650 = vmatprep.subr.bf16.mxu0 %v2924_v32  ;;  %v2982_v31 = vld [vmem:[#allocation9 + $0x208] sm:$0xff]  }
  0xad   :  { %2672 = vmatprep.subr.bf16.mxu1 %v2925_v33  ;;  %v2983_v32 = vld [vmem:[#allocation9 + $0x288] sm:$0xff]   ;;  %v2984_v33 = vld [vmem:[#allocation9 + $0x250] sm:$0xff]  }
  0xaf   :  { %2651 = vmatpush3.bf16.msra.mxu0 %v2926_v34  ;;  %v2985_v34 = vld [vmem:[#allocation9 + $0x2d0] sm:$0xff]  }
  0xb0   :  { %2673 = vmatpush3.bf16.msra.mxu1 %v2927_v35  ;;  %2652 = vmatprep.subr.bf16.mxu0 %v2928_v36  ;;  %v2986_v35 = vld [vmem:[#allocation9 + $0x210] sm:$0xff]  }
  0xb1   :  { %2674 = vmatprep.subr.bf16.mxu1 %v2929_v37  ;;  %v2987_v36 = vld [vmem:[#allocation9 + $0x290] sm:$0xff]   ;;  %v2988_v37 = vld [vmem:[#allocation9 + $0x258] sm:$0xff]  }
  0xb3   :  { %2653 = vmatpush3.bf16.msra.mxu0 %v2930_v38  ;;  %v2989_v38 = vld [vmem:[#allocation9 + $0x2d8] sm:$0xff]  }
  0xb4   :  { %2675 = vmatpush3.bf16.msra.mxu1 %v2931_v39  ;;  %2654 = vmatprep.subr.bf16.mxu0 %v2932_v40  ;;  %v2990_v39 = vld [vmem:[#allocation9 + $0x218] sm:$0xff]  }
  0xb5   :  { %2676 = vmatprep.subr.bf16.mxu1 %v2933_v41  ;;  %v2991_v40 = vld [vmem:[#allocation9 + $0x298] sm:$0xff]   ;;  %v2992_v41 = vld [vmem:[#allocation9 + $0x260] sm:$0xff]  }
  0xb7   :  { %2655 = vmatpush3.bf16.msra.mxu0 %v2934_v42  ;;  %v2993_v42 = vld [vmem:[#allocation9 + $0x2e0] sm:$0xff]  }
  0xb8   :  { %2677 = vmatpush3.bf16.msra.mxu1 %v2935_v43  ;;  %2684 = vmatprep.subr.bf16.mxu0 %v2940_v50  ;;  %v2994_v43 = vld [vmem:[#allocation9 + $0x220] sm:$0xff]   ;;  %v3001_v50 = vld [vmem:[#allocation9 + $0x2f0] sm:$0xff]  }
  0xb9   :  { %2706 = vmatprep.subr.bf16.mxu1 %v2941_v51  ;;  %v3002_v51 = vld [vmem:[#allocation9 + $0x230] sm:$0xff]  }
  0xba   :  { %1942 = vmatmul.mubr.bf16.vlgmr.msra.gmra.mrb[8].mxu0 %v2394_v46  ;;  %v2997_v46 = vld [vmem:[#allocation9 + $0x2e8] sm:$0xff]  }
  0xbb   :  { %1982 = vmatmul.mubr.bf16.vlgmr.msra.gmra.mrb[8].mxu1 %v2396_v48  ;;  %2685 = vmatpush3.bf16.msra.mxu0 %v2942_v52  ;;  %v2999_v48 = vld [vmem:[#allocation9 + $0x2a8] sm:$0xff]   ;;  %v3003_v52 = vld [vmem:[#allocation9 + $0x2b0] sm:$0xff]  }
  0xbc   :  { %2707 = vmatpush3.bf16.msra.mxu1 %v2943_v53  ;;  %2686 = vmatprep.subr.bf16.mxu0 %v2944_v54  ;;  %v3004_v53 = vld [vmem:[#allocation9 + $0x278] sm:$0xff]  }
  0xbd   :  { %2708 = vmatprep.subr.bf16.mxu1 %v2945_v55  ;;  %2021 = vmatprep.mubr.bf16.mxu0 %v2399_v22  ;;  %v3005_v54 = vld [vmem:[#allocation9 + $0x2f8] sm:$0xff]   ;;  %v3035_v22 = vld [vmem:[#allocation9 + $0x3a8] sm:$0xff]  }
  0xbe   :  { %2061 = vmatprep.mubr.bf16.mxu1 %v2401_v25  ;;  %v3006_v55 = vld [vmem:[#allocation9 + $0x238] sm:$0xff]   ;;  %v3038_v25 = vld [vmem:[#allocation9 + $0x330] sm:$0xff]  }
  0xbf   :  { %2687 = vmatpush3.bf16.msra.mxu0 %v2946_v56  ;;  %v3007_v56 = vld [vmem:[#allocation9 + $0x2b8] sm:$0xff]  }
  0xc0   :  { %2709 = vmatpush3.bf16.msra.mxu1 %v2947_v57  ;;  %2688 = vmatprep.subr.bf16.mxu0 %v2948_v58  ;;  %v818_v57 = vld [vmem:[#allocation6 + $0x20] sm:$0xff] }
  0xc1   :  { %2710 = vmatprep.subr.bf16.mxu1 %v2949_v59  ;;  %v2402_v58 = vcombine.low %v818_v57, %v818_v57  ;;  %v2403_v59 = vcombine.high %v818_v57, %v818_v57 }
  0xc3   :  { %2689 = vmatpush3.bf16.msra.mxu0 %v2950_v60  ;;  %v819_v60 = vld [vmem:[#allocation6 + $0x28] sm:$0xff] }
  0xc4   :  { %2711 = vmatpush3.bf16.msra.mxu1 %v2951_v61  ;;  %2690 = vmatprep.subr.bf16.mxu0 %v2952_v62  ;;  %v2404_v61 = vcombine.low %v819_v60, %v819_v60  ;;  %v2405_v62 = vcombine.high %v819_v60, %v819_v60 }
  0xc5   :  { %2712 = vmatprep.subr.bf16.mxu1 %v2953_v63  ;;  %v3012_v63 = vld [vmem:[#allocation9 + $0x340] sm:$0xff]  }
  0xc7   :  { %2691 = vmatpush3.bf16.msra.mxu0 %v2954_v0  ;;  %v3013_v0 = vld [vmem:[#allocation9 + $0x3c0] sm:$0xff]  }
  0xc8   :  { %2713 = vmatpush3.bf16.msra.mxu1 %v2955_v1  ;;  %2692 = vmatprep.subr.bf16.mxu0 %v2956_v2  ;;  %v3014_v1 = vld [vmem:[#allocation9 + $0x300] sm:$0xff]  }
  0xc9   :  { %2714 = vmatprep.subr.bf16.mxu1 %v2957_v3  ;;  %v3015_v2 = vld [vmem:[#allocation9 + $0x380] sm:$0xff]   ;;  %v3016_v3 = vld [vmem:[#allocation9 + $0x348] sm:$0xff]  }
  0xcb   :  { %2693 = vmatpush3.bf16.msra.mxu0 %v2958_v4  ;;  %v3017_v4 = vld [vmem:[#allocation9 + $0x3c8] sm:$0xff]  }
  0xcc   :  { %2715 = vmatpush3.bf16.msra.mxu1 %v2959_v5  ;;  %2694 = vmatprep.subr.bf16.mxu0 %v2960_v6  ;;  %v3018_v5 = vld [vmem:[#allocation9 + $0x308] sm:$0xff]  }
  0xcd   :  { %2716 = vmatprep.subr.bf16.mxu1 %v2961_v7  ;;  %v3019_v6 = vld [vmem:[#allocation9 + $0x388] sm:$0xff]   ;;  %v3020_v7 = vld [vmem:[#allocation9 + $0x350] sm:$0xff]  }
  0xcf   :  { %2695 = vmatpush3.bf16.msra.mxu0 %v2962_v8  ;;  %v3021_v8 = vld [vmem:[#allocation9 + $0x3d0] sm:$0xff]  }
  0xd0   :  { %2717 = vmatpush3.bf16.msra.mxu1 %v2963_v9  ;;  %2696 = vmatprep.subr.bf16.mxu0 %v2964_v10  ;;  %v3022_v9 = vld [vmem:[#allocation9 + $0x310] sm:$0xff]  }
  0xd1   :  { %2718 = vmatprep.subr.bf16.mxu1 %v2965_v11  ;;  %v3023_v10 = vld [vmem:[#allocation9 + $0x390] sm:$0xff]   ;;  %v3024_v11 = vld [vmem:[#allocation9 + $0x358] sm:$0xff]  }
  0xd3   :  { %2697 = vmatpush3.bf16.msra.mxu0 %v2966_v12  ;;  %v3025_v12 = vld [vmem:[#allocation9 + $0x3d8] sm:$0xff]  }
  0xd4   :  { %2719 = vmatpush3.bf16.msra.mxu1 %v2967_v13  ;;  %2698 = vmatprep.subr.bf16.mxu0 %v2968_v14  ;;  %v3026_v13 = vld [vmem:[#allocation9 + $0x318] sm:$0xff]  }
  0xd5   :  { %2720 = vmatprep.subr.bf16.mxu1 %v2969_v16  ;;  %v3027_v14 = vld [vmem:[#allocation9 + $0x398] sm:$0xff]   ;;  %v3029_v16 = vld [vmem:[#allocation9 + $0x3e0] sm:$0xff]  }
  0xd7   :  { %2699 = vmatpush3.bf16.msra.mxu0 %v2970_v17  ;;  %v3030_v17 = vld [vmem:[#allocation9 + $0x320] sm:$0xff]  }
  0xd8   :  { %2721 = vmatpush3.bf16.msra.mxu1 %v2971_v18  ;;  %2728 = vmatprep.subr.bf16.mxu0 %v2976_v24  ;;  %v3031_v18 = vld [vmem:[#allocation9 + $0x3a0] sm:$0xff]   ;;  %v3037_v24 = vld [vmem:[#allocation9 + $0x3f0] sm:$0xff]  }
  0xd9   :  { %2750 = vmatprep.subr.bf16.mxu1 %v2977_v26  ;;  %v3039_v26 = vld [vmem:[#allocation9 + $0x3b0] sm:$0xff]  }
  0xda   :  { %2022 = vmatmul.mubr.bf16.vlgmr.msra.gmra.mrb[12].mxu0 %v2398_v21  ;;  %v3034_v21 = vld [vmem:[#allocation9 + $0x328] sm:$0xff]  }
  0xdb   :  { %2062 = vmatmul.mubr.bf16.vlgmr.msra.gmra.mrb[12].mxu1 %v2400_v23  ;;  %2729 = vmatpush3.bf16.msra.mxu0 %v2978_v27  ;;  %v3036_v23 = vld [vmem:[#allocation9 + $0x370] sm:$0xff]   ;;  %v3040_v27 = vld [vmem:[#allocation9 + $0x378] sm:$0xff]  }
  0xdc   :  { %2751 = vmatpush3.bf16.msra.mxu1 %v2979_v28  ;;  %2730 = vmatprep.subr.bf16.mxu0 %v2980_v29  ;;  %v3041_v28 = vld [vmem:[#allocation9 + $0x3f8] sm:$0xff]  }
  0xdd   :  { %2752 = vmatprep.subr.bf16.mxu1 %v2981_v30  ;;  %2101 = vmatprep.mubr.bf16.mxu0 %v2403_v59  ;;  %v3042_v29 = vld [vmem:[#allocation9 + $0x338] sm:$0xff]  }
  0xde   :  { %2141 = vmatprep.mubr.bf16.mxu1 %v2405_v62  ;;  %v3043_v30 = vld [vmem:[#allocation9 + $0x3b8] sm:$0xff]  }
  0xdf   :  { %2731 = vmatpush3.bf16.msra.mxu0 %v2982_v31  ;;  %v820_v31 = vld [vmem:[#allocation6 + $0x30] sm:$0xff] }
  0xe0   :  { %2753 = vmatpush3.bf16.msra.mxu1 %v2983_v32  ;;  %2732 = vmatprep.subr.bf16.mxu0 %v2984_v33  ;;  %v821_v32 = vld [vmem:[#allocation6 + $0x38] sm:$0xff]  ;;  %v2406_v33 = vcombine.low %v820_v31, %v820_v31 }
  0xe1   :  { %2754 = vmatprep.subr.bf16.mxu1 %v2985_v34  ;;  %v2407_v34 = vcombine.high %v820_v31, %v820_v31 }
  0xe3   :  { %2733 = vmatpush3.bf16.msra.mxu0 %v2986_v35  ;;  %v2408_v35 = vcombine.low %v821_v32, %v821_v32 }
  0xe4   :  { %2755 = vmatpush3.bf16.msra.mxu1 %v2987_v36  ;;  %2734 = vmatprep.subr.bf16.mxu0 %v2988_v37  ;;  %v2409_v36 = vcombine.high %v821_v32, %v821_v32  ;;  %v2229_v37 = vld [vmem:[%s3340_s2] sm:$0xff] }
  0xe5   :  { %2756 = vmatprep.subr.bf16.mxu1 %v2989_v38  ;;  %vm2231_vm0 = vcmp.eq.s32.totalorder %v2229_v37, 0  ;;  %vm2244_vm1 = vcmp.eq.s32.totalorder %v2229_v37, 1  ;;  %v3190_v38 = vmov 0.0  }
  0xe7   :  { %2735 = vmatpush3.bf16.msra.mxu0 %v2990_v39  ;;  %v2538_v39 = vsel %vm2231_vm0, 1.0, %v3190_v38 }
  0xe8   :  { %2757 = vmatpush3.bf16.msra.mxu1 %v2991_v40  ;;  %2736 = vmatprep.subr.bf16.mxu0 %v2992_v41  ;;  %v2539_v40 = vsel %vm2244_vm1, 1.0, %v3190_v38 }
  0xe9   :  { %2758 = vmatprep.subr.bf16.mxu1 %v2993_v42  ;;  %v2827_v41 = vpack.i.bf16 %v2539_v40, %v2538_v39 }
  0xeb   :  { %2737 = vmatpush3.bf16.msra.mxu0 %v2994_v43  ;;  %2828 = vperm.xlu0 %2826, %v2827_v41  }
  0xec   :  { %2759 = vmatpush3.bf16.msra.mxu1 %v2995_v44  ;;  %2738 = vmatprep.subr.bf16.mxu0 %v2996_v45  ;;  %v2320_v44 = vld [vmem:[%s3344_s6] ss:$0 sm:$0xff] }
  0xed   :  { %2760 = vmatprep.subr.bf16.mxu1 %v2997_v46 }
  0xef   :  { %2739 = vmatpush3.bf16.msra.mxu0 %v2998_v47 }
  0xf0   :  { %2761 = vmatpush3.bf16.msra.mxu1 %v2999_v48  ;;  %2740 = vmatprep.subr.bf16.mxu0 %v3000_v49 }
  0xf1   :  { %2762 = vmatprep.subr.bf16.mxu1 %v3001_v50 }
  0xf3   :  { %2741 = vmatpush3.bf16.msra.mxu0 %v3002_v51 }
  0xf4   :  { %2763 = vmatpush3.bf16.msra.mxu1 %v3003_v52  ;;  %2742 = vmatprep.subr.bf16.mxu0 %v3004_v53 }
  0xf5   :  { %2764 = vmatprep.subr.bf16.mxu1 %v3005_v54 }
  0xf7   :  { %2743 = vmatpush3.bf16.msra.mxu0 %v3006_v55 }
  0xf8   :  { %2765 = vmatpush3.bf16.msra.mxu1 %v3007_v56  ;;  %2772 = vmatprep.subr.bf16.mxu0 %v3012_v63 }
  0xf9   :  { %2794 = vmatprep.subr.bf16.mxu1 %v3013_v0 }
  0xfa   :  { %2102 = vmatmul.mubr.bf16.vlgmr.msra.gmra.mrb[16].mxu0 %v2402_v58 }
  0xfb   :  { %2142 = vmatmul.mubr.bf16.vlgmr.msra.gmra.mrb[16].mxu1 %v2404_v61  ;;  %2773 = vmatpush3.bf16.msra.mxu0 %v3014_v1 }
  0xfc   :  { %2795 = vmatpush3.bf16.msra.mxu1 %v3015_v2  ;;  %2774 = vmatprep.subr.bf16.mxu0 %v3016_v3 }
  0xfd   :  { %2796 = vmatprep.subr.bf16.mxu1 %v3017_v4  ;;  %2181 = vmatprep.mubr.bf16.mxu0 %v2407_v34 }
  0xfe   :  { %2221 = vmatprep.mubr.bf16.mxu1 %v2409_v36 }
  0xff   :  { %2775 = vmatpush3.bf16.msra.mxu0 %v3018_v5 }
 0x100   :  { %2797 = vmatpush3.bf16.msra.mxu1 %v3019_v6  ;;  %2776 = vmatprep.subr.bf16.mxu0 %v3020_v7  ;;  %v2393_v6 = vld [vmem:[%s3346_s8] ss:$0 sm:$0xff] }
 0x101   :  { %2798 = vmatprep.subr.bf16.mxu1 %v3021_v8 }
 0x103   :  { %2777 = vmatpush3.bf16.msra.mxu0 %v3022_v9 }
 0x104   :  { %2799 = vmatpush3.bf16.msra.mxu1 %v3023_v10  ;;  %2778 = vmatprep.subr.bf16.mxu0 %v3024_v11 }
 0x105   :  { %2800 = vmatprep.subr.bf16.mxu1 %v3025_v12 }
 0x107   :  { %2779 = vmatpush3.bf16.msra.mxu0 %v3026_v13 }
 0x108   :  { %2801 = vmatpush3.bf16.msra.mxu1 %v3027_v14  ;;  %2780 = vmatprep.subr.bf16.mxu0 %v3028_v15  ;;  %v2239_v14 = vlaneseq }
 0x109   :  { %2802 = vmatprep.subr.bf16.mxu1 %v3029_v16 }
 0x10b   :  { %2781 = vmatpush3.bf16.msra.mxu0 %v3030_v17 }
 0x10c   :  { %2803 = vmatpush3.bf16.msra.mxu1 %v3031_v18  ;;  %2782 = vmatprep.subr.bf16.mxu0 %v3032_v19  ;;  %v2240_v18 = vshrl.u32 %v2239_v14, 7 }
 0x10d   :  { %2804 = vmatprep.subr.bf16.mxu1 %v3033_v20 }
 0x10e   :  { %v2241_v19 = vsub.s32 0, %v2240_v18  ;;  %v2254_v20 = vsub.s32 1, %v2240_v18 }
 0x10f   :  { %2783 = vmatpush3.bf16.msra.mxu0 %v3034_v21  ;;  %v2230_v21 = vld [vmem:[%s3342_s4] sm:$0xff] }
 0x110   :  { %2805 = vmatpush3.bf16.msra.mxu1 %v3035_v22  ;;  %2784 = vmatprep.subr.bf16.mxu0 %v3036_v23  ;;  %v2242_v22 = vrot.slane %v2230_v21, %v2241_v19  ;;  %v2255_v23 = vrot.slane %v2230_v21, %v2254_v20 }
 0x111   :  { %2806 = vmatprep.subr.bf16.mxu1 %v3037_v24 }
 0x113   :  { %2785 = vmatpush3.bf16.msra.mxu0 %v3038_v25 }
 0x114   :  { %2807 = vmatpush3.bf16.msra.mxu1 %v3039_v26  ;;  %2786 = vmatprep.subr.bf16.mxu0 %v3040_v27 }
 0x115   :  { %2808 = vmatprep.subr.bf16.mxu1 %v3041_v28 }
 0x117   :  { %2787 = vmatpush3.bf16.msra.mxu0 %v3042_v29 }
 0x118   :  { %2809 = vmatpush3.bf16.msra.mxu1 %v3043_v30 }
 0x11a   :  { %2182 = vmatmul.mubr.bf16.vlgmr.msra.gmra.mrb[20].mxu0 %v2406_v33 }
 0x11b   :  { %2222 = vmatmul.mubr.bf16.vlgmr.msra.gmra.mrb[20].mxu1 %v2408_v35 }
 0x14d   :  { %v2568_v42 = vpop.f32.mrb[0].mxu0 }
 0x14e   :  { %v2590_v43 = vpop.f32.mrb[0].mxu1  ;;  %v2569_v45 = vpop.f32.mrb[1].mxu0 }
 0x14f   :  { %v2591_v46 = vpop.f32.mrb[1].mxu1  ;;  %v2570_v47 = vadd.f32 %v2569_v45, %v2568_v42  ;;  %v2571_v49 = vpop.f32.mrb[2].mxu0 }
 0x150   :  { %v2592_v48 = vadd.f32 %v2591_v46, %v2590_v43  ;;  %v2593_v50 = vpop.f32.mrb[2].mxu1  ;;  %v2572_v51 = vpop.f32.mrb[3].mxu0 }
 0x151   :  { %v2594_v52 = vpop.f32.mrb[3].mxu1  ;;  %v689_v53 = vadd.f32 %v2570_v47, %v2320_v44 }
 0x153   :  { %v729_v54 = vadd.f32 %v2592_v48, %v689_v53 }
 0x16a   :  { %v2829_v24 = vpop.permute.xlu0 %2828 }
 0x16b   :  { %v2831_v25 = vunpack.i.h.bf16 %v2829_v24  ;;  %v2830_v26 = vunpack.i.l.bf16 %v2829_v24 }
 0x16d   :  { %v2612_v55 = vpop.f32.mrb[4].mxu0  ;;  %v2256_v27 = vmul.f32 %v2831_v25, %v2255_v23  ;;  %v2243_v28 = vmul.f32 %v2830_v26, %v2242_v22  ;;  %v2294_v22 = vstv %s2540_s15 }
 0x16e   :  { %v2634_v56 = vpop.f32.mrb[4].mxu1  ;;  %v2613_v57 = vpop.f32.mrb[5].mxu0 }
 0x16f   :  { %v2635_v58 = vpop.f32.mrb[5].mxu1  ;;  %v2614_v59 = vadd.f32 %v2613_v57, %v2612_v55  ;;  %v2615_v61 = vpop.f32.mrb[6].mxu0  ;;  %v2257_v29 = vadd.f32 %v2256_v27, %v2243_v28 }
 0x170   :  { %v2636_v60 = vadd.f32 %v2635_v58, %v2634_v56  ;;  %v2637_v62 = vpop.f32.mrb[6].mxu1  ;;  %v2616_v63 = vpop.f32.mrb[7].mxu0 }
 0x171   :  { %v2638_v0 = vpop.f32.mrb[7].mxu1  ;;  %v769_v1 = vadd.f32 %v2614_v59, %v729_v54  ;;  %v2267_v30 = vmul.f32 %v2257_v29, %v2257_v29 }
 0x172   :  { %v2258_v0 = vld [vmem:[%s3341_s3] sm:$0xf]  ;;  %s3191_s3 = smov [#allocation12]  }
 0x173   :  { %v3309_v2 = vadd.f32 %v2636_v60, %v769_v1  ;;  %2268 = vadd.xlane.f32.xlu1 %v2267_v30  ;;  %s2304_s16 = sshll.u32 %s3191_s3, 4  ;;  %s2305_s16 = int_to_ptr.vmem [resolvable:$true] %s2304_s16 }
 0x174   :  { %s3150_s21 = scalar_lea.vmem %s2305_s16, 256  ;;  %p3155_p10 = scmp.lt.s32.totalorder %s2305_s16, %s2305_s16 }
 0x175   :  { %v2260_v3 = vmul.f32 %v3309_v2, %v3309_v2  ;;  %p3151_p9 = scmp.ne.s32.totalorder %s2305_s16, %s3150_s21  ;;  %p3156_p11 = scmp.lt.s32.totalorder %s3150_s21, %s3150_s21 }
 0x177   :  { %2261 = vadd.xlane.f32.xlu0 %v2260_v3  ;;  %p3157_p12 = por %p3156_p11, %p3155_p10 }
 0x179   :  { %p3158_p13 = pnand %p3157_p12, %p3151_p9 }
 0x18d   :  { %v2656_v4 = vpop.f32.mrb[8].mxu0 }
 0x18e   :  { %v2678_v5 = vpop.f32.mrb[8].mxu1  ;;  %v2657_v7 = vpop.f32.mrb[9].mxu0 }
 0x18f   :  { %v2658_v8 = vadd.f32 %v2657_v7, %v2656_v4  ;;  %v2679_v9 = vpop.f32.mrb[9].mxu1  ;;  %v2659_v10 = vpop.f32.mrb[10].mxu0 }
 0x190   :  { %v2680_v11 = vadd.f32 %v2679_v9, %v2678_v5  ;;  %v2681_v12 = vpop.f32.mrb[10].mxu1  ;;  %v2660_v13 = vpop.f32.mrb[11].mxu0  ;;  %v2259_v5 = vunpack.c.l.bf16 %v2258_v0 }
 0x191   :  { %v1944_v15 = vadd.f32 %v2658_v8, %v2393_v6  ;;  %v2682_v16 = vpop.f32.mrb[11].mxu1 }
 0x192   :  { %v2271_v7 = vmul.f32 %v2259_v5, %v2259_v5 }
 0x193   :  { %v1984_v17 = vadd.f32 %v2680_v11, %v1944_v15 }
 0x1ad   :  { %v2700_v31 = vpop.f32.mrb[12].mxu0 }
 0x1ae   :  { %v2722_v32 = vpop.f32.mrb[12].mxu1  ;;  %v2701_v33 = vpop.f32.mrb[13].mxu0 }
 0x1af   :  { %v2702_v34 = vadd.f32 %v2701_v33, %v2700_v31  ;;  %v2723_v35 = vpop.f32.mrb[13].mxu1  ;;  %v2703_v36 = vpop.f32.mrb[14].mxu0 }
 0x1b0   :  { %v2724_v37 = vadd.f32 %v2723_v35, %v2722_v32  ;;  %v2725_v38 = vpop.f32.mrb[14].mxu1  ;;  %v2704_v39 = vpop.f32.mrb[15].mxu0 }
 0x1b1   :  { %v2024_v40 = vadd.f32 %v2702_v34, %v1984_v17  ;;  %v2726_v41 = vpop.f32.mrb[15].mxu1  ;;  %v2291_v17 = vstv %s2290_s14 }
 0x1b3   :  { %v2064_v42 = vadd.f32 %v2724_v37, %v2024_v40 }
 0x1cd   :  { %v2744_v43 = vpop.f32.mrb[16].mxu0 }
 0x1ce   :  { %v2766_v44 = vpop.f32.mrb[16].mxu1  ;;  %v2745_v45 = vpop.f32.mrb[17].mxu0 }
 0x1cf   :  { %v2767_v46 = vpop.f32.mrb[17].mxu1  ;;  %v2746_v47 = vadd.f32 %v2745_v45, %v2744_v43  ;;  %v2747_v49 = vpop.f32.mrb[18].mxu0 }
 0x1d0   :  { %v2768_v48 = vadd.f32 %v2767_v46, %v2766_v44  ;;  %v2769_v50 = vpop.f32.mrb[18].mxu1  ;;  %v2748_v51 = vpop.f32.mrb[19].mxu0 }
 0x1d1   :  { %v2770_v52 = vpop.f32.mrb[19].mxu1  ;;  %v2104_v53 = vadd.f32 %v2746_v47, %v2064_v42 }
 0x1d3   :  { %v2144_v54 = vadd.f32 %v2768_v48, %v2104_v53 }
 0x1ed   :  { %v2788_v55 = vpop.f32.mrb[20].mxu0 }
 0x1ee   :  { %v2810_v56 = vpop.f32.mrb[20].mxu1  ;;  %v2789_v57 = vpop.f32.mrb[21].mxu0 }
 0x1ef   :  { %v2790_v58 = vadd.f32 %v2789_v57, %v2788_v55  ;;  %v2811_v59 = vpop.f32.mrb[21].mxu1  ;;  %v2791_v60 = vpop.f32.mrb[22].mxu0 }
 0x1f0   :  { %v2812_v61 = vadd.f32 %v2811_v59, %v2810_v56  ;;  %v2813_v62 = vpop.f32.mrb[22].mxu1  ;;  %v2792_v63 = vpop.f32.mrb[23].mxu0 }
 0x1f1   :  { %v2184_v1 = vadd.f32 %v2790_v58, %v2144_v54  ;;  %v2814_v3 = vpop.f32.mrb[23].mxu1 }
 0x1f3   :  { %v2224_v4 = vadd.f32 %v2812_v61, %v2184_v1 }
 0x1f5   :  { %v2263_v6 = vmul.f32 %v2224_v4, %v2224_v4 }
 0x1f7   :  { %2264 = vadd.xlane.f32.xlu1 %v2263_v6 }
 0x1fb   :  { %2272 = vadd.xlane.f32.xlu1 %v2271_v7 }
 0x200   :  { %v2269_v8 = vpop.xlane.xlu1 %2268 }
 0x204   :  { %v2262_v9 = vpop.xlane.xlu0 %2261 }
 0x284   :  { %v2265_v10 = vpop.xlane.xlu1 %2264 }
 0x285   :  { %v2266_v11 = vadd.f32 %v2265_v10, %v2262_v9 }
 0x287   :  { %v2270_v12 = vadd.f32 %v2269_v8, %v2266_v11 }
 0x288   :  { %v2273_v13 = vpop.xlane.xlu1 %2272 }
 0x289   :  { %v2274_v14 = vadd.f32 %v2273_v13, %v2270_v12 }
 0x28b   :  { %v2275_v15 = vmax.f32 %v2274_v14, 1e-24 }
 0x28d   :  { %3048 = vrsqrt.f32 %v2275_v15 }
 0x297   :  { %v3049_v16 = vpop.eup %3048 }
 0x298   :  { %v2277_v18 = vmul.f32 %v3049_v16, %v2274_v14  ;;  %v2278_v19 = vmul.f32 %v3049_v16, %v3309_v2  ;;  %v2281_v20 = vmul.f32 %v3049_v16, %v2224_v4  ;;  %v2284_v21 = vmul.f32 %v3049_v16, %v2257_v29 }
 0x299   :  { %v2287_v23 = vmul.f32 %v3049_v16, %v2259_v5 }
 0x29a   :  { %v2292_v24 = vmul.f32 %v2291_v17, %v2277_v18  ;;  %v2544_v25 = vpack.c.bf16 %v2281_v20, %v2278_v19 }
 0x29b   :  { %v2549_v26 = vpack.c.bf16 %v2287_v23, %v2284_v21 }
 0x29c   :  { %v2295_v27 = vadd.f32 %v2294_v22, %v2292_v24  ;;  %2545 = vst [vmem:[#allocation12] sm:$0xff] %v2544_v25  }
 0x29d   :  { %2551 = vst [vmem:[#allocation12 + $0x8] sm:$0xff] %v2549_v26  }
 0x29e   :  { %2297 = vst.msk [vmem:[%s3349_s11] sm:$0xff] %vm2296_vm2, %v2295_v27 }
 0x29f   :  { %3161 = shalt.err (!%p3158_p13)
}
 0x2a0   :  { %s3162_s22 = scalar_lea.hbm %s3348_s10, 256 }
 0x2a1   :  { %p3163_p0 = scmp.ne.s32.totalorder %s3348_s10, %s3162_s22  ;;  %p3166_p1 = scmp.lt.u32.totalorder %s3162_s22, %s3348_s10 }
 0x2a3   :  { %p3168_p2 = pnand %p3166_p1, %p3163_p0 }
 0x2a5   :  { %3171 = shalt.err (!%p3168_p2)
}
 0x2a6   :  { %2307 = dma.vmem_to_hbm [thread:$0]  %s2305_s16, 256, %s3348_s10, [#allocation4]  }
 0x2a7   :  { %3180 = dma.done.wait [#allocation4], 256  }
 0x2a8   :  { %3181 = vsyncadd [#allocation4], 4294967040 }
 0x2a9   :  { %2315 = vsyncpa [#allocation3], 1 }
 0x2aa   :  { %2316 = vsyncpa [#allocation7], 1 }
 0x2ab   :  { %2317 = vsyncpa [#allocation10], 1 }
 0x2ac   :  { %2318 = vsyncpa [#allocation4], 1 }
 0x2ad   :  { %2319 = vsyncpa [#allocation5], 1 }

// kernel: tpu_custom_call.1
= control target key start
LH: loop header
LB: loop body
LE: loop exit
PB: predicated region body
PF: predicated region fallthrough
CT: control target
= control target key end

     0   :  { %17 = vsyncpa [#allocation3], 0  ;;  %s3338_s0 = inlined_call_operand.hbm [shape: bf16[8,1024], index: 0, kind: input, shape index: {}]   ;;  %s3339_s1 = inlined_call_operand.hbm [shape: bf16[8,2048], index: 1, kind: input, shape index: {}]   ;;  %s3340_s2 = inlined_call_operand.vmem [shape: s32[8,1], index: 2, kind: input, shape index: {}]   ;;  %s3341_s3 = inlined_call_operand.vmem [shape: bf16[8,128], index: 3, kind: input, shape index: {}]   ;;  %s3342_s4 = inlined_call_operand.vmem [shape: f32[8,128], index: 4, kind: input, shape index: {}]   ;;  %s3343_s5 = inlined_call_operand.hbm [shape: bf16[1024,128], index: 5, kind: input, shape index: {}]   ;;  %s3344_s6 = inlined_call_operand.vmem [shape: f32[1,128], index: 6, kind: input, shape index: {}]   ;;  %s3345_s7 = inlined_call_operand.hbm [shape: bf16[2048,128], index: 7, kind: input, shape index: {}]   ;;  %s3346_s8 = inlined_call_operand.vmem [shape: f32[1,128], index: 8, kind: input, shape index: {}]   ;;  %s3347_s9 = inlined_call_operand.vmem [shape: f32[2], index: 9, kind: input, shape index: {}]   ;;  %s3348_s10 = inlined_call_operand.hbm [shape: bf16[8,512], index: 10, kind: output, shape index: {0}]   ;;  %s3349_s11 = inlined_call_operand.vmem [shape: f32[8,1], index: 11, kind: output, shape index: {1}]  }
   0x1   :  { %18 = vsyncpa [#allocation7], 0 }
   0x2   :  { %19 = vsyncpa [#allocation10], 0 }
   0x3   :  { %20 = vsyncpa [#allocation5], 0 }
   0x4   :  { %21 = vsyncpa [#allocation4], 0  ;;  %s3182_s17 = smov [#allocation6]   ;;  %s3183_s19 = smov [#allocation2]  }
   0x5   :  { %s38_s18 = sshll.u32 %s3182_s17, 4  ;;  %s28_s20 = sshll.u32 %s3183_s19, 4  ;;  %s39_s18 = int_to_ptr.vmem [resolvable:$true] %s38_s18  ;;  %s29_s20 = int_to_ptr.vmem [resolvable:$true] %s28_s20 }
   0x6   :  { %s3050_s23 = scalar_lea.hbm %s3339_s1, 1024 }
   0x7   :  { %p3051_p0 = scmp.ne.s32.totalorder %s3339_s1, %s3050_s23  ;;  %p3054_p1 = scmp.lt.u32.totalorder %s3050_s23, %s3339_s1 }
   0x9   :  { %p3056_p2 = pnand %p3054_p1, %p3051_p0 }
   0xb   :  { %3059 = shalt.err (!%p3056_p2)
}
   0xc   :  { %s3060_s28 = scalar_lea.vmem %s39_s18, 1024  ;;  %p3065_p4 = scmp.lt.s32.totalorder %s39_s18, %s39_s18 }
   0xd   :  { %p3061_p3 = scmp.ne.s32.totalorder %s39_s18, %s3060_s28  ;;  %p3066_p5 = scmp.lt.s32.totalorder %s3060_s28, %s3060_s28 }
   0xf   :  { %p3067_p6 = por %p3066_p5, %p3065_p4 }
  0x11   :  { %p3068_p7 = pnand %p3067_p6, %p3061_p3 }
  0x13   :  { %3071 = shalt.err (!%p3068_p7)
}
  0x14   :  { %41 = dma.hbm_to_vmem [thread:$0]  %s3339_s1, 1024, %s39_s18, [#allocation7]  }
  0x15   :  { %s3072_s14 = scalar_lea.hbm %s3338_s0, 512 }
  0x16   :  { %p3073_p8 = scmp.ne.s32.totalorder %s3338_s0, %s3072_s14  ;;  %p3076_p9 = scmp.lt.u32.totalorder %s3072_s14, %s3338_s0 }
  0x18   :  { %p3078_p10 = pnand %p3076_p9, %p3073_p8 }
  0x1a   :  { %3081 = shalt.err (!%p3078_p10)
}
  0x1b   :  { %s3082_s21 = scalar_lea.vmem %s29_s20, 512  ;;  %p3087_p12 = scmp.lt.s32.totalorder %s29_s20, %s29_s20 }
  0x1c   :  { %p3083_p11 = scmp.ne.s32.totalorder %s29_s20, %s3082_s21  ;;  %p3088_p13 = scmp.lt.s32.totalorder %s3082_s21, %s3082_s21 }
  0x1e   :  { %p3089_p0 = por %p3088_p13, %p3087_p12 }
  0x20   :  { %p3090_p1 = pnand %p3089_p0, %p3083_p11 }
  0x22   :  { %3093 = shalt.err (!%p3090_p1)
}
  0x23   :  { %31 = dma.hbm_to_vmem [thread:$0]  %s3338_s0, 512, %s29_s20, [#allocation3]  }
  0x24   :  { %s3184_s22 = smov [#allocation8]   ;;  %s3094_s26 = scalar_lea.hbm %s3343_s5, 8192 }
  0x25   :  { %s53_s23 = sshll.u32 %s3184_s22, 4  ;;  %p3095_p2 = scmp.ne.s32.totalorder %s3343_s5, %s3094_s26  ;;  %s54_s23 = int_to_ptr.vmem [resolvable:$true] %s53_s23 }
  0x26   :  { %p3098_p3 = scmp.lt.u32.totalorder %s3094_s26, %s3343_s5 }
  0x28   :  { %p3100_p4 = pnand %p3098_p3, %p3095_p2 }
  0x2a   :  { %3103 = shalt.err (!%p3100_p4)
}
  0x2b   :  { %s3104_s12 = scalar_lea.vmem %s54_s23, 8192  ;;  %p3109_p6 = scmp.lt.s32.totalorder %s54_s23, %s54_s23 }
  0x2c   :  { %p3105_p5 = scmp.ne.s32.totalorder %s54_s23, %s3104_s12  ;;  %p3110_p7 = scmp.lt.s32.totalorder %s3104_s12, %s3104_s12 }
  0x2e   :  { %p3111_p8 = por %p3110_p7, %p3109_p6 }
  0x30   :  { %p3112_p9 = pnand %p3111_p8, %p3105_p5 }
  0x32   :  { %3115 = shalt.err (!%p3112_p9)
}
  0x33   :  { %s3185_s0 = smov 64   ;;  %s3186_s20 = smov 4  }
  0x34   :  { %59 = dma.hbm_to_vmem [thread:$0]  %s3343_s5, 8192, %s54_s23, [#allocation7], %s3185_s0, %s3185_s0, %s3186_s20  }
  0x35   :  { %s3187_s15 = smov [#allocation9]   ;;  %s82_s21 = sshll.u32 %s3347_s9, 4  ;;  %s83_s21 = int_to_ptr.vmem [resolvable:$true] %s82_s21 }
  0x36   :  { %s67_s16 = sshll.u32 %s3187_s15, 4  ;;  %s3116_s22 = scalar_lea.hbm %s3345_s7, 16384  ;;  %s68_s16 = int_to_ptr.vmem [resolvable:$true] %s67_s16 }
  0x37   :  { %p3117_p10 = scmp.ne.s32.totalorder %s3345_s7, %s3116_s22  ;;  %p3120_p11 = scmp.lt.u32.totalorder %s3116_s22, %s3345_s7 }
  0x39   :  { %p3122_p12 = pnand %p3120_p11, %p3117_p10 }
  0x3b   :  { %3125 = shalt.err (!%p3122_p12)
}
  0x3c   :  { %s3126_s5 = scalar_lea.vmem %s68_s16, 16384  ;;  %p3131_p0 = scmp.lt.s32.totalorder %s68_s16, %s68_s16 }
  0x3d   :  { %p3127_p13 = scmp.ne.s32.totalorder %s68_s16, %s3126_s5  ;;  %p3132_p1 = scmp.lt.s32.totalorder %s3126_s5, %s3126_s5 }
  0x3f   :  { %p3133_p2 = por %p3132_p1, %p3131_p0 }
  0x41   :  { %p3134_p3 = pnand %p3133_p2, %p3127_p13 }
  0x43   :  { %3137 = shalt.err (!%p3134_p3)
}
  0x44   :  { %73 = dma.hbm_to_vmem [thread:$0]  %s3345_s7, 16384, %s68_s16, [#allocation10], %s3185_s0, %s3185_s0, %s3186_s20  }
  0x45   :  { %s3138_s28 = scalar_lea.vmem %s83_s21, 16  ;;  %p3143_p5 = scmp.lt.s32.totalorder %s83_s21, %s83_s21 }
  0x46   :  { %p3139_p4 = scmp.ne.s32.totalorder %s83_s21, %s3138_s28  ;;  %p3144_p6 = scmp.lt.s32.totalorder %s3138_s28, %s3138_s28 }
  0x48   :  { %p3145_p7 = por %p3144_p6, %p3143_p5 }
  0x4a   :  { %p3146_p8 = pnand %p3145_p7, %p3139_p4 }
  0x4c   :  { %3149 = shalt.err (!%p3146_p8)
}
  0x4d   :  { %s3188_s29 = smov [#allocation11]  }
  0x4e   :  { %85 = dma.vmem_to_smem %s83_s21, 16, %s3188_s29, [#allocation5]  }
  0x4f   :  { %3172 = dma.done.wait [#allocation3], 512  }
  0x50   :  { %3173 = vsyncadd [#allocation3], 4294966784 }
  0x51   :  { %3174 = dma.done.wait [#allocation7], 9216  }
  0x52   :  { %3175 = vsyncadd [#allocation7], 4294958080 }
  0x53   :  { %3176 = dma.done.wait [#allocation10], 16384  }
  0x54   :  { %3177 = vsyncadd [#allocation10], 4294950912 }
  0x55   :  { %3178 = dma.done.wait [#allocation5], 16  }
  0x56   :  { %3179 = vsyncadd [#allocation5], 4294967280 }
  0x57   :  { %101 = sfence }
  0x58   :  { %v2832_v0 = vld [vmem:[#allocation8 + $0x40] sm:$0xff]   ;;  %v2836_v4 = vld [vmem:[#allocation8 + $0x48] sm:$0xff]   ;;  %v2840_v8 = vld [vmem:[#allocation8 + $0x50] sm:$0xff]   ;;  %s2290_s14 = sld [smem:[#allocation11]]  ;;  %s2540_s15 = sld [smem:[#allocation11 + $0x1]]  ;;  %vm2296_vm2 = vcmask 7168  }
  0x59   :  { %v2833_v1 = vld [vmem:[#allocation8 + $0xc0] sm:$0xff]   ;;  %2552 = vmatprep.subr.bf16.mxu0 %v2832_v0  ;;  %v2837_v5 = vld [vmem:[#allocation8 + $0xc8] sm:$0xff]   ;;  %v2841_v9 = vld [vmem:[#allocation8 + $0xd0] sm:$0xff]  }
  0x5a   :  { %v2834_v2 = vld [vmem:[#allocation8] sm:$0xff]   ;;  %2574 = vmatprep.subr.bf16.mxu1 %v2833_v1  ;;  %v2838_v6 = vld [vmem:[#allocation8 + $0x8] sm:$0xff]   ;;  %v2842_v10 = vld [vmem:[#allocation8 + $0x10] sm:$0xff]  }
  0x5b   :  { %v2835_v3 = vld [vmem:[#allocation8 + $0x80] sm:$0xff]   ;;  %2553 = vmatpush3.bf16.msra.mxu0 %v2834_v2  ;;  %v2839_v7 = vld [vmem:[#allocation8 + $0x88] sm:$0xff]   ;;  %v2843_v11 = vld [vmem:[#allocation8 + $0x90] sm:$0xff]  }
  0x5c   :  { %2575 = vmatpush3.bf16.msra.mxu1 %v2835_v3  ;;  %2554 = vmatprep.subr.bf16.mxu0 %v2836_v4  ;;  %v2844_v12 = vld [vmem:[#allocation8 + $0x58] sm:$0xff]   ;;  %v2848_v16 = vld [vmem:[#allocation8 + $0x60] sm:$0xff]   ;;  %v2852_v20 = vld [vmem:[#allocation8 + $0x68] sm:$0xff]  }
  0x5d   :  { %2576 = vmatprep.subr.bf16.mxu1 %v2837_v5  ;;  %v2845_v13 = vld [vmem:[#allocation8 + $0xd8] sm:$0xff]   ;;  %v2849_v17 = vld [vmem:[#allocation8 + $0xe0] sm:$0xff]   ;;  %v2853_v21 = vld [vmem:[#allocation8 + $0xe8] sm:$0xff]  }
  0x5e   :  { %v2846_v14 = vld [vmem:[#allocation8 + $0x18] sm:$0xff]   ;;  %v2850_v18 = vld [vmem:[#allocation8 + $0x20] sm:$0xff]   ;;  %v2854_v22 = vld [vmem:[#allocation8 + $0x28] sm:$0xff]  }
  0x5f   :  { %2555 = vmatpush3.bf16.msra.mxu0 %v2838_v6  ;;  %v2847_v15 = vld [vmem:[#allocation8 + $0x98] sm:$0xff]   ;;  %v2851_v19 = vld [vmem:[#allocation8 + $0xa0] sm:$0xff]   ;;  %v2855_v23 = vld [vmem:[#allocation8 + $0xa8] sm:$0xff]  }
  0x60   :  { %2577 = vmatpush3.bf16.msra.mxu1 %v2839_v7  ;;  %2556 = vmatprep.subr.bf16.mxu0 %v2840_v8  ;;  %v2856_v24 = vld [vmem:[#allocation8 + $0x70] sm:$0xff]   ;;  %v2860_v28 = vld [vmem:[#allocation8 + $0x78] sm:$0xff]   ;;  %v103_v32 = vld [vmem:[#allocation2] sm:$0xff] }
  0x61   :  { %2578 = vmatprep.subr.bf16.mxu1 %v2841_v9  ;;  %v2857_v25 = vld [vmem:[#allocation8 + $0xf0] sm:$0xff]   ;;  %v2861_v29 = vld [vmem:[#allocation8 + $0xf8] sm:$0xff]   ;;  %v104_v33 = vld [vmem:[#allocation2 + $0x8] sm:$0xff]  ;;  %v2321_v34 = vcombine.low %v103_v32, %v103_v32  ;;  %v2322_v35 = vcombine.high %v103_v32, %v103_v32 }
  0x62   :  { %v2858_v26 = vld [vmem:[#allocation8 + $0x30] sm:$0xff]   ;;  %v2862_v30 = vld [vmem:[#allocation8 + $0x38] sm:$0xff]   ;;  %v2323_v36 = vcombine.low %v104_v33, %v104_v33  ;;  %v2324_v37 = vcombine.high %v104_v33, %v104_v33  ;;  %v2868_v38 = vld [vmem:[#allocation8 + $0x140] sm:$0xff]  }
  0x63   :  { %2557 = vmatpush3.bf16.msra.mxu0 %v2842_v10  ;;  %v2859_v27 = vld [vmem:[#allocation8 + $0xb0] sm:$0xff]   ;;  %v2863_v31 = vld [vmem:[#allocation8 + $0xb8] sm:$0xff]   ;;  %v2869_v39 = vld [vmem:[#allocation8 + $0x1c0] sm:$0xff]   ;;  %686 = vmatprep.mubr.bf16.mxu0 %v2322_v35 }
  0x64   :  { %2579 = vmatpush3.bf16.msra.mxu1 %v2843_v11  ;;  %2558 = vmatprep.subr.bf16.mxu0 %v2844_v12  ;;  %v2870_v40 = vld [vmem:[#allocation8 + $0x100] sm:$0xff]   ;;  %v2872_v42 = vld [vmem:[#allocation8 + $0x148] sm:$0xff]   ;;  %v2876_v46 = vld [vmem:[#allocation8 + $0x150] sm:$0xff]  }
  0x65   :  { %2580 = vmatprep.subr.bf16.mxu1 %v2845_v13  ;;  %726 = vmatprep.mubr.bf16.mxu1 %v2324_v37  ;;  %v2871_v41 = vld [vmem:[#allocation8 + $0x180] sm:$0xff]   ;;  %v2873_v43 = vld [vmem:[#allocation8 + $0x1c8] sm:$0xff]   ;;  %v2877_v47 = vld [vmem:[#allocation8 + $0x1d0] sm:$0xff]  }
  0x66   :  { %v2874_v44 = vld [vmem:[#allocation8 + $0x108] sm:$0xff]   ;;  %v2878_v48 = vld [vmem:[#allocation8 + $0x110] sm:$0xff]   ;;  %v2880_v50 = vld [vmem:[#allocation8 + $0x158] sm:$0xff]  }
  0x67   :  { %2559 = vmatpush3.bf16.msra.mxu0 %v2846_v14  ;;  %v2875_v45 = vld [vmem:[#allocation8 + $0x188] sm:$0xff]   ;;  %v2879_v49 = vld [vmem:[#allocation8 + $0x190] sm:$0xff]   ;;  %v2881_v51 = vld [vmem:[#allocation8 + $0x1d8] sm:$0xff]  }
  0x68   :  { %2581 = vmatpush3.bf16.msra.mxu1 %v2847_v15  ;;  %2560 = vmatprep.subr.bf16.mxu0 %v2848_v16  ;;  %v2882_v52 = vld [vmem:[#allocation8 + $0x118] sm:$0xff]   ;;  %v2884_v54 = vld [vmem:[#allocation8 + $0x160] sm:$0xff]   ;;  %v2888_v58 = vld [vmem:[#allocation8 + $0x168] sm:$0xff]  }
  0x69   :  { %2582 = vmatprep.subr.bf16.mxu1 %v2849_v17  ;;  %v2883_v53 = vld [vmem:[#allocation8 + $0x198] sm:$0xff]   ;;  %v2885_v55 = vld [vmem:[#allocation8 + $0x1e0] sm:$0xff]   ;;  %v2889_v59 = vld [vmem:[#allocation8 + $0x1e8] sm:$0xff]  }
  0x6a   :  { %v2886_v56 = vld [vmem:[#allocation8 + $0x120] sm:$0xff]   ;;  %v2890_v60 = vld [vmem:[#allocation8 + $0x128] sm:$0xff]   ;;  %v2892_v62 = vld [vmem:[#allocation8 + $0x170] sm:$0xff]  }
  0x6b   :  { %2561 = vmatpush3.bf16.msra.mxu0 %v2850_v18  ;;  %v2887_v57 = vld [vmem:[#allocation8 + $0x1a0] sm:$0xff]   ;;  %v2891_v61 = vld [vmem:[#allocation8 + $0x1a8] sm:$0xff]   ;;  %v2893_v63 = vld [vmem:[#allocation8 + $0x1f0] sm:$0xff]  }
  0x6c   :  { %2583 = vmatpush3.bf16.msra.mxu1 %v2851_v19  ;;  %2562 = vmatprep.subr.bf16.mxu0 %v2852_v20  ;;  %v2894_v0 = vld [vmem:[#allocation8 + $0x130] sm:$0xff]   ;;  %v2896_v2 = vld [vmem:[#allocation8 + $0x178] sm:$0xff]   ;;  %v2904_v12 = vld [vmem:[#allocation9 + $0x40] sm:$0xff]  }
  0x6d   :  { %2584 = vmatprep.subr.bf16.mxu1 %v2853_v21  ;;  %v2895_v1 = vld [vmem:[#allocation8 + $0x1b0] sm:$0xff]   ;;  %v2897_v3 = vld [vmem:[#allocation8 + $0x1f8] sm:$0xff]   ;;  %v2905_v13 = vld [vmem:[#allocation9 + $0xc0] sm:$0xff]  }
  0x6e   :  { %v2898_v4 = vld [vmem:[#allocation8 + $0x138] sm:$0xff]   ;;  %v105_v6 = vld [vmem:[#allocation2 + $0x10] sm:$0xff]  ;;  %v2906_v14 = vld [vmem:[#allocation9] sm:$0xff]  }
  0x6f   :  { %2563 = vmatpush3.bf16.msra.mxu0 %v2854_v22  ;;  %v2899_v5 = vld [vmem:[#allocation8 + $0x1b8] sm:$0xff]   ;;  %v2325_v7 = vcombine.low %v105_v6, %v105_v6  ;;  %v2326_v8 = vcombine.high %v105_v6, %v105_v6  ;;  %v2907_v15 = vld [vmem:[#allocation9 + $0x80] sm:$0xff]   ;;  %v2908_v16 = vld [vmem:[#allocation9 + $0x48] sm:$0xff]  }
  0x70   :  { %2585 = vmatpush3.bf16.msra.mxu1 %v2855_v23  ;;  %2564 = vmatprep.subr.bf16.mxu0 %v2856_v24  ;;  %v106_v9 = vld [vmem:[#allocation2 + $0x18] sm:$0xff]  ;;  %v2909_v17 = vld [vmem:[#allocation9 + $0xc8] sm:$0xff]   ;;  %v2912_v20 = vld [vmem:[#allocation9 + $0x50] sm:$0xff]  }
  0x71   :  { %2586 = vmatprep.subr.bf16.mxu1 %v2857_v25  ;;  %v2327_v10 = vcombine.low %v106_v9, %v106_v9  ;;  %v2328_v11 = vcombine.high %v106_v9, %v106_v9  ;;  %v2910_v18 = vld [vmem:[#allocation9 + $0x8] sm:$0xff]   ;;  %v2913_v21 = vld [vmem:[#allocation9 + $0xd0] sm:$0xff]   ;;  %v2916_v24 = vld [vmem:[#allocation9 + $0x58] sm:$0xff]  }
  0x72   :  { %v2911_v19 = vld [vmem:[#allocation9 + $0x88] sm:$0xff]   ;;  %v2914_v22 = vld [vmem:[#allocation9 + $0x10] sm:$0xff]   ;;  %v2917_v25 = vld [vmem:[#allocation9 + $0xd8] sm:$0xff]  }
  0x73   :  { %2565 = vmatpush3.bf16.msra.mxu0 %v2858_v26  ;;  %v2915_v23 = vld [vmem:[#allocation9 + $0x90] sm:$0xff]   ;;  %v2918_v26 = vld [vmem:[#allocation9 + $0x18] sm:$0xff]   ;;  %v2924_v32 = vld [vmem:[#allocation9 + $0x68] sm:$0xff]  }
  0x74   :  { %2587 = vmatpush3.bf16.msra.mxu1 %v2859_v27  ;;  %2566 = vmatprep.subr.bf16.mxu0 %v2860_v28  ;;  %v2919_v27 = vld [vmem:[#allocation9 + $0x98] sm:$0xff]   ;;  %v2920_v28 = vld [vmem:[#allocation9 + $0x60] sm:$0xff]   ;;  %v2925_v33 = vld [vmem:[#allocation9 + $0xe8] sm:$0xff]  }
  0x75   :  { %2588 = vmatprep.subr.bf16.mxu1 %v2861_v29  ;;  %v2921_v29 = vld [vmem:[#allocation9 + $0xe0] sm:$0xff]   ;;  %v2927_v35 = vld [vmem:[#allocation9 + $0xa8] sm:$0xff]   ;;  %v2929_v37 = vld [vmem:[#allocation9 + $0xf0] sm:$0xff]  }
  0x76   :  { %v2960_v6 = vld [vmem:[#allocation9 + $0x168] sm:$0xff]  }
  0x77   :  { %2567 = vmatpush3.bf16.msra.mxu0 %v2862_v30  ;;  %v2922_v30 = vld [vmem:[#allocation9 + $0x20] sm:$0xff]   ;;  %v2963_v9 = vld [vmem:[#allocation9 + $0x1a8] sm:$0xff]  }
  0x78   :  { %2589 = vmatpush3.bf16.msra.mxu1 %v2863_v31  ;;  %2596 = vmatprep.subr.bf16.mxu0 %v2868_v38  ;;  %v2923_v31 = vld [vmem:[#allocation9 + $0xa0] sm:$0xff]   ;;  %v2930_v38 = vld [vmem:[#allocation9 + $0x30] sm:$0xff]  }
  0x79   :  { %2618 = vmatprep.subr.bf16.mxu1 %v2869_v39  ;;  %v2931_v39 = vld [vmem:[#allocation9 + $0xb0] sm:$0xff]  }
  0x7a   :  { %687 = vmatmul.mubr.bf16.vlgmr.msra.gmra.mrb[0].mxu0 %v2321_v34  ;;  %v2926_v34 = vld [vmem:[#allocation9 + $0x28] sm:$0xff]  }
  0x7b   :  { %727 = vmatmul.mubr.bf16.vlgmr.msra.gmra.mrb[0].mxu1 %v2323_v36  ;;  %2597 = vmatpush3.bf16.msra.mxu0 %v2870_v40  ;;  %v2928_v36 = vld [vmem:[#allocation9 + $0x70] sm:$0xff]   ;;  %v2932_v40 = vld [vmem:[#allocation9 + $0x78] sm:$0xff]  }
  0x7c   :  { %2619 = vmatpush3.bf16.msra.mxu1 %v2871_v41  ;;  %2598 = vmatprep.subr.bf16.mxu0 %v2872_v42  ;;  %v2933_v41 = vld [vmem:[#allocation9 + $0xf8] sm:$0xff]  }
  0x7d   :  { %2620 = vmatprep.subr.bf16.mxu1 %v2873_v43  ;;  %766 = vmatprep.mubr.bf16.mxu0 %v2326_v8  ;;  %v2934_v42 = vld [vmem:[#allocation9 + $0x38] sm:$0xff]   ;;  %v2962_v8 = vld [vmem:[#allocation9 + $0x128] sm:$0xff]  }
  0x7e   :  { %806 = vmatprep.mubr.bf16.mxu1 %v2328_v11  ;;  %v2935_v43 = vld [vmem:[#allocation9 + $0xb8] sm:$0xff]   ;;  %v2965_v11 = vld [vmem:[#allocation9 + $0x1f0] sm:$0xff]  }
  0x7f   :  { %2599 = vmatpush3.bf16.msra.mxu0 %v2874_v44  ;;  %v814_v44 = vld [vmem:[#allocation6] sm:$0xff] }
  0x80   :  { %2621 = vmatpush3.bf16.msra.mxu1 %v2875_v45  ;;  %2600 = vmatprep.subr.bf16.mxu0 %v2876_v46  ;;  %v815_v45 = vld [vmem:[#allocation6 + $0x8] sm:$0xff]  ;;  %v2394_v46 = vcombine.low %v814_v44, %v814_v44 }
  0x81   :  { %2622 = vmatprep.subr.bf16.mxu1 %v2877_v47  ;;  %v2395_v47 = vcombine.high %v814_v44, %v814_v44  ;;  %v2995_v44 = vld [vmem:[#allocation9 + $0x2a0] sm:$0xff]  }
  0x83   :  { %2601 = vmatpush3.bf16.msra.mxu0 %v2878_v48  ;;  %v2396_v48 = vcombine.low %v815_v45, %v815_v45 }
  0x84   :  { %2623 = vmatpush3.bf16.msra.mxu1 %v2879_v49  ;;  %2602 = vmatprep.subr.bf16.mxu0 %v2880_v50  ;;  %v2397_v49 = vcombine.high %v815_v45, %v815_v45  ;;  %v2940_v50 = vld [vmem:[#allocation9 + $0x140] sm:$0xff]   ;;  %v2996_v45 = vld [vmem:[#allocation9 + $0x268] sm:$0xff]  }
  0x85   :  { %2624 = vmatprep.subr.bf16.mxu1 %v2881_v51  ;;  %v2941_v51 = vld [vmem:[#allocation9 + $0x1c0] sm:$0xff]  }
  0x87   :  { %2603 = vmatpush3.bf16.msra.mxu0 %v2882_v52  ;;  %v2942_v52 = vld [vmem:[#allocation9 + $0x100] sm:$0xff]  }
  0x88   :  { %2625 = vmatpush3.bf16.msra.mxu1 %v2883_v53  ;;  %2604 = vmatprep.subr.bf16.mxu0 %v2884_v54  ;;  %v2943_v53 = vld [vmem:[#allocation9 + $0x180] sm:$0xff]   ;;  %v2944_v54 = vld [vmem:[#allocation9 + $0x148] sm:$0xff]  }
  0x89   :  { %2626 = vmatprep.subr.bf16.mxu1 %v2885_v55  ;;  %v2945_v55 = vld [vmem:[#allocation9 + $0x1c8] sm:$0xff]  }
  0x8b   :  { %2605 = vmatpush3.bf16.msra.mxu0 %v2886_v56  ;;  %v2946_v56 = vld [vmem:[#allocation9 + $0x108] sm:$0xff]  }
  0x8c   :  { %2627 = vmatpush3.bf16.msra.mxu1 %v2887_v57  ;;  %2606 = vmatprep.subr.bf16.mxu0 %v2888_v58  ;;  %v2947_v57 = vld [vmem:[#allocation9 + $0x188] sm:$0xff]   ;;  %v2948_v58 = vld [vmem:[#allocation9 + $0x150] sm:$0xff]  }
  0x8d   :  { %2628 = vmatprep.subr.bf16.mxu1 %v2889_v59  ;;  %v2949_v59 = vld [vmem:[#allocation9 + $0x1d0] sm:$0xff]  }
  0x8f   :  { %2607 = vmatpush3.bf16.msra.mxu0 %v2890_v60  ;;  %v2950_v60 = vld [vmem:[#allocation9 + $0x110] sm:$0xff]  }
  0x90   :  { %2629 = vmatpush3.bf16.msra.mxu1 %v2891_v61  ;;  %2608 = vmatprep.subr.bf16.mxu0 %v2892_v62  ;;  %v2951_v61 = vld [vmem:[#allocation9 + $0x190] sm:$0xff]   ;;  %v2952_v62 = vld [vmem:[#allocation9 + $0x158] sm:$0xff]  }
  0x91   :  { %2630 = vmatprep.subr.bf16.mxu1 %v2893_v63  ;;  %v2953_v63 = vld [vmem:[#allocation9 + $0x1d8] sm:$0xff]  }
  0x93   :  { %2609 = vmatpush3.bf16.msra.mxu0 %v2894_v0  ;;  %v2954_v0 = vld [vmem:[#allocation9 + $0x118] sm:$0xff]  }
  0x94   :  { %2631 = vmatpush3.bf16.msra.mxu1 %v2895_v1  ;;  %2610 = vmatprep.subr.bf16.mxu0 %v2896_v2  ;;  %v2955_v1 = vld [vmem:[#allocation9 + $0x198] sm:$0xff]   ;;  %v2956_v2 = vld [vmem:[#allocation9 + $0x160] sm:$0xff]  }
  0x95   :  { %2632 = vmatprep.subr.bf16.mxu1 %v2897_v3  ;;  %v2957_v3 = vld [vmem:[#allocation9 + $0x1e0] sm:$0xff]  }
  0x97   :  { %2611 = vmatpush3.bf16.msra.mxu0 %v2898_v4  ;;  %v2958_v4 = vld [vmem:[#allocation9 + $0x120] sm:$0xff]  }
  0x98   :  { %2633 = vmatpush3.bf16.msra.mxu1 %v2899_v5  ;;  %2640 = vmatprep.subr.bf16.mxu0 %v2904_v12  ;;  %v2959_v5 = vld [vmem:[#allocation9 + $0x1a0] sm:$0xff]   ;;  %v2966_v12 = vld [vmem:[#allocation9 + $0x130] sm:$0xff]  }
  0x99   :  { %2662 = vmatprep.subr.bf16.mxu1 %v2905_v13  ;;  %v2967_v13 = vld [vmem:[#allocation9 + $0x1b0] sm:$0xff]  }
  0x9a   :  { %767 = vmatmul.mubr.bf16.vlgmr.msra.gmra.mrb[4].mxu0 %v2325_v7  ;;  %v2961_v7 = vld [vmem:[#allocation9 + $0x1e8] sm:$0xff]  }
  0x9b   :  { %807 = vmatmul.mubr.bf16.vlgmr.msra.gmra.mrb[4].mxu1 %v2327_v10  ;;  %2641 = vmatpush3.bf16.msra.mxu0 %v2906_v14  ;;  %v2964_v10 = vld [vmem:[#allocation9 + $0x170] sm:$0xff]   ;;  %v2968_v14 = vld [vmem:[#allocation9 + $0x178] sm:$0xff]  }
  0x9c   :  { %2663 = vmatpush3.bf16.msra.mxu1 %v2907_v15  ;;  %2642 = vmatprep.subr.bf16.mxu0 %v2908_v16  ;;  %v3189_v15 = vmov 0   ;;  %v2969_v16 = vld [vmem:[#allocation9 + $0x1f8] sm:$0xff]  }
  0x9d   :  { %2664 = vmatprep.subr.bf16.mxu1 %v2909_v17  ;;  %1941 = vmatprep.mubr.bf16.mxu0 %v2395_v47  ;;  %v2970_v17 = vld [vmem:[#allocation9 + $0x138] sm:$0xff]   ;;  %v2998_v47 = vld [vmem:[#allocation9 + $0x228] sm:$0xff]  }
  0x9e   :  { %1981 = vmatprep.mubr.bf16.mxu1 %v2397_v49  ;;  %2826 = vset.pattern.permute.xlu0 %v3189_v15  ;;  %v3000_v49 = vld [vmem:[#allocation9 + $0x270] sm:$0xff]   ;;  %v3028_v15 = vld [vmem:[#allocation9 + $0x360] sm:$0xff]  }
  0x9f   :  { %2643 = vmatpush3.bf16.msra.mxu0 %v2910_v18  ;;  %v2971_v18 = vld [vmem:[#allocation9 + $0x1b8] sm:$0xff]  }
  0xa0   :  { %2665 = vmatpush3.bf16.msra.mxu1 %v2911_v19  ;;  %2644 = vmatprep.subr.bf16.mxu0 %v2912_v20  ;;  %v816_v19 = vld [vmem:[#allocation6 + $0x10] sm:$0xff]  ;;  %v817_v20 = vld [vmem:[#allocation6 + $0x18] sm:$0xff] }
  0xa1   :  { %2666 = vmatprep.subr.bf16.mxu1 %v2913_v21  ;;  %v2398_v21 = vcombine.low %v816_v19, %v816_v19 }
  0xa3   :  { %2645 = vmatpush3.bf16.msra.mxu0 %v2914_v22  ;;  %v2399_v22 = vcombine.high %v816_v19, %v816_v19  ;;  %v3032_v19 = vld [vmem:[#allocation9 + $0x368] sm:$0xff]  }
  0xa4   :  { %2667 = vmatpush3.bf16.msra.mxu1 %v2915_v23  ;;  %2646 = vmatprep.subr.bf16.mxu0 %v2916_v24  ;;  %v2400_v23 = vcombine.low %v817_v20, %v817_v20  ;;  %v2976_v24 = vld [vmem:[#allocation9 + $0x240] sm:$0xff]  }
  0xa5   :  { %2668 = vmatprep.subr.bf16.mxu1 %v2917_v25  ;;  %v2401_v25 = vcombine.high %v817_v20, %v817_v20  ;;  %v3033_v20 = vld [vmem:[#allocation9 + $0x3e8] sm:$0xff]  }
  0xa7   :  { %2647 = vmatpush3.bf16.msra.mxu0 %v2918_v26  ;;  %v2977_v26 = vld [vmem:[#allocation9 + $0x2c0] sm:$0xff]  }
  0xa8   :  { %2669 = vmatpush3.bf16.msra.mxu1 %v2919_v27  ;;  %2648 = vmatprep.subr.bf16.mxu0 %v2920_v28  ;;  %v2978_v27 = vld [vmem:[#allocation9 + $0x200] sm:$0xff]  }
  0xa9   :  { %2670 = vmatprep.subr.bf16.mxu1 %v2921_v29  ;;  %v2979_v28 = vld [vmem:[#allocation9 + $0x280] sm:$0xff]   ;;  %v2980_v29 = vld [vmem:[#allocation9 + $0x248] sm:$0xff]  }
  0xab   :  { %2649 = vmatpush3.bf16.msra.mxu0 %v2922_v30  ;;  %v2981_v30 = vld [vmem:[#allocation9 + $0x2c8] sm:$0xff]  }
  0xac   :  { %2671 = vmatpush3.bf16.msra.mxu1 %v2923_v31  ;;  %2650 = vmatprep.subr.bf16.mxu0 %v2924_v32  ;;  %v2982_v31 = vld [vmem:[#allocation9 + $0x208] sm:$0xff]  }
  0xad   :  { %2672 = vmatprep.subr.bf16.mxu1 %v2925_v33  ;;  %v2983_v32 = vld [vmem:[#allocation9 + $0x288] sm:$0xff]   ;;  %v2984_v33 = vld [vmem:[#allocation9 + $0x250] sm:$0xff]  }
  0xaf   :  { %2651 = vmatpush3.bf16.msra.mxu0 %v2926_v34  ;;  %v2985_v34 = vld [vmem:[#allocation9 + $0x2d0] sm:$0xff]  }
  0xb0   :  { %2673 = vmatpush3.bf16.msra.mxu1 %v2927_v35  ;;  %2652 = vmatprep.subr.bf16.mxu0 %v2928_v36  ;;  %v2986_v35 = vld [vmem:[#allocation9 + $0x210] sm:$0xff]  }
  0xb1   :  { %2674 = vmatprep.subr.bf16.mxu1 %v2929_v37  ;;  %v2987_v36 = vld [vmem:[#allocation9 + $0x290] sm:$0xff]   ;;  %v2988_v37 = vld [vmem:[#allocation9 + $0x258] sm:$0xff]  }
  0xb3   :  { %2653 = vmatpush3.bf16.msra.mxu0 %v2930_v38  ;;  %v2989_v38 = vld [vmem:[#allocation9 + $0x2d8] sm:$0xff]  }
  0xb4   :  { %2675 = vmatpush3.bf16.msra.mxu1 %v2931_v39  ;;  %2654 = vmatprep.subr.bf16.mxu0 %v2932_v40  ;;  %v2990_v39 = vld [vmem:[#allocation9 + $0x218] sm:$0xff]  }
  0xb5   :  { %2676 = vmatprep.subr.bf16.mxu1 %v2933_v41  ;;  %v2991_v40 = vld [vmem:[#allocation9 + $0x298] sm:$0xff]   ;;  %v2992_v41 = vld [vmem:[#allocation9 + $0x260] sm:$0xff]  }
  0xb7   :  { %2655 = vmatpush3.bf16.msra.mxu0 %v2934_v42  ;;  %v2993_v42 = vld [vmem:[#allocation9 + $0x2e0] sm:$0xff]  }
  0xb8   :  { %2677 = vmatpush3.bf16.msra.mxu1 %v2935_v43  ;;  %2684 = vmatprep.subr.bf16.mxu0 %v2940_v50  ;;  %v2994_v43 = vld [vmem:[#allocation9 + $0x220] sm:$0xff]   ;;  %v3001_v50 = vld [vmem:[#allocation9 + $0x2f0] sm:$0xff]  }
  0xb9   :  { %2706 = vmatprep.subr.bf16.mxu1 %v2941_v51  ;;  %v3002_v51 = vld [vmem:[#allocation9 + $0x230] sm:$0xff]  }
  0xba   :  { %1942 = vmatmul.mubr.bf16.vlgmr.msra.gmra.mrb[8].mxu0 %v2394_v46  ;;  %v2997_v46 = vld [vmem:[#allocation9 + $0x2e8] sm:$0xff]  }
  0xbb   :  { %1982 = vmatmul.mubr.bf16.vlgmr.msra.gmra.mrb[8].mxu1 %v2396_v48  ;;  %2685 = vmatpush3.bf16.msra.mxu0 %v2942_v52  ;;  %v2999_v48 = vld [vmem:[#allocation9 + $0x2a8] sm:$0xff]   ;;  %v3003_v52 = vld [vmem:[#allocation9 + $0x2b0] sm:$0xff]  }
  0xbc   :  { %2707 = vmatpush3.bf16.msra.mxu1 %v2943_v53  ;;  %2686 = vmatprep.subr.bf16.mxu0 %v2944_v54  ;;  %v3004_v53 = vld [vmem:[#allocation9 + $0x278] sm:$0xff]  }
  0xbd   :  { %2708 = vmatprep.subr.bf16.mxu1 %v2945_v55  ;;  %2021 = vmatprep.mubr.bf16.mxu0 %v2399_v22  ;;  %v3005_v54 = vld [vmem:[#allocation9 + $0x2f8] sm:$0xff]   ;;  %v3035_v22 = vld [vmem:[#allocation9 + $0x3a8] sm:$0xff]  }
  0xbe   :  { %2061 = vmatprep.mubr.bf16.mxu1 %v2401_v25  ;;  %v3006_v55 = vld [vmem:[#allocation9 + $0x238] sm:$0xff]   ;;  %v3038_v25 = vld [vmem:[#allocation9 + $0x330] sm:$0xff]  }
  0xbf   :  { %2687 = vmatpush3.bf16.msra.mxu0 %v2946_v56  ;;  %v3007_v56 = vld [vmem:[#allocation9 + $0x2b8] sm:$0xff]  }
  0xc0   :  { %2709 = vmatpush3.bf16.msra.mxu1 %v2947_v57  ;;  %2688 = vmatprep.subr.bf16.mxu0 %v2948_v58  ;;  %v818_v57 = vld [vmem:[#allocation6 + $0x20] sm:$0xff] }
  0xc1   :  { %2710 = vmatprep.subr.bf16.mxu1 %v2949_v59  ;;  %v2402_v58 = vcombine.low %v818_v57, %v818_v57  ;;  %v2403_v59 = vcombine.high %v818_v57, %v818_v57 }
  0xc3   :  { %2689 = vmatpush3.bf16.msra.mxu0 %v2950_v60  ;;  %v819_v60 = vld [vmem:[#allocation6 + $0x28] sm:$0xff] }
  0xc4   :  { %2711 = vmatpush3.bf16.msra.mxu1 %v2951_v61  ;;  %2690 = vmatprep.subr.bf16.mxu0 %v2952_v62  ;;  %v2404_v61 = vcombine.low %v819_v60, %v819_v60  ;;  %v2405_v62 = vcombine.high %v819_v60, %v819_v60 }
  0xc5   :  { %2712 = vmatprep.subr.bf16.mxu1 %v2953_v63  ;;  %v3012_v63 = vld [vmem:[#allocation9 + $0x340] sm:$0xff]  }
  0xc7   :  { %2691 = vmatpush3.bf16.msra.mxu0 %v2954_v0  ;;  %v3013_v0 = vld [vmem:[#allocation9 + $0x3c0] sm:$0xff]  }
  0xc8   :  { %2713 = vmatpush3.bf16.msra.mxu1 %v2955_v1  ;;  %2692 = vmatprep.subr.bf16.mxu0 %v2956_v2  ;;  %v3014_v1 = vld [vmem:[#allocation9 + $0x300] sm:$0xff]  }
  0xc9   :  { %2714 = vmatprep.subr.bf16.mxu1 %v2957_v3  ;;  %v3015_v2 = vld [vmem:[#allocation9 + $0x380] sm:$0xff]   ;;  %v3016_v3 = vld [vmem:[#allocation9 + $0x348] sm:$0xff]  }
  0xcb   :  { %2693 = vmatpush3.bf16.msra.mxu0 %v2958_v4  ;;  %v3017_v4 = vld [vmem:[#allocation9 + $0x3c8] sm:$0xff]  }
  0xcc   :  { %2715 = vmatpush3.bf16.msra.mxu1 %v2959_v5  ;;  %2694 = vmatprep.subr.bf16.mxu0 %v2960_v6  ;;  %v3018_v5 = vld [vmem:[#allocation9 + $0x308] sm:$0xff]  }
  0xcd   :  { %2716 = vmatprep.subr.bf16.mxu1 %v2961_v7  ;;  %v3019_v6 = vld [vmem:[#allocation9 + $0x388] sm:$0xff]   ;;  %v3020_v7 = vld [vmem:[#allocation9 + $0x350] sm:$0xff]  }
  0xcf   :  { %2695 = vmatpush3.bf16.msra.mxu0 %v2962_v8  ;;  %v3021_v8 = vld [vmem:[#allocation9 + $0x3d0] sm:$0xff]  }
  0xd0   :  { %2717 = vmatpush3.bf16.msra.mxu1 %v2963_v9  ;;  %2696 = vmatprep.subr.bf16.mxu0 %v2964_v10  ;;  %v3022_v9 = vld [vmem:[#allocation9 + $0x310] sm:$0xff]  }
  0xd1   :  { %2718 = vmatprep.subr.bf16.mxu1 %v2965_v11  ;;  %v3023_v10 = vld [vmem:[#allocation9 + $0x390] sm:$0xff]   ;;  %v3024_v11 = vld [vmem:[#allocation9 + $0x358] sm:$0xff]  }
  0xd3   :  { %2697 = vmatpush3.bf16.msra.mxu0 %v2966_v12  ;;  %v3025_v12 = vld [vmem:[#allocation9 + $0x3d8] sm:$0xff]  }
  0xd4   :  { %2719 = vmatpush3.bf16.msra.mxu1 %v2967_v13  ;;  %2698 = vmatprep.subr.bf16.mxu0 %v2968_v14  ;;  %v3026_v13 = vld [vmem:[#allocation9 + $0x318] sm:$0xff]  }
  0xd5   :  { %2720 = vmatprep.subr.bf16.mxu1 %v2969_v16  ;;  %v3027_v14 = vld [vmem:[#allocation9 + $0x398] sm:$0xff]   ;;  %v3029_v16 = vld [vmem:[#allocation9 + $0x3e0] sm:$0xff]  }
  0xd7   :  { %2699 = vmatpush3.bf16.msra.mxu0 %v2970_v17  ;;  %v3030_v17 = vld [vmem:[#allocation9 + $0x320] sm:$0xff]  }
  0xd8   :  { %2721 = vmatpush3.bf16.msra.mxu1 %v2971_v18  ;;  %2728 = vmatprep.subr.bf16.mxu0 %v2976_v24  ;;  %v3031_v18 = vld [vmem:[#allocation9 + $0x3a0] sm:$0xff]   ;;  %v3037_v24 = vld [vmem:[#allocation9 + $0x3f0] sm:$0xff]  }
  0xd9   :  { %2750 = vmatprep.subr.bf16.mxu1 %v2977_v26  ;;  %v3039_v26 = vld [vmem:[#allocation9 + $0x3b0] sm:$0xff]  }
  0xda   :  { %2022 = vmatmul.mubr.bf16.vlgmr.msra.gmra.mrb[12].mxu0 %v2398_v21  ;;  %v3034_v21 = vld [vmem:[#allocation9 + $0x328] sm:$0xff]  }
  0xdb   :  { %2062 = vmatmul.mubr.bf16.vlgmr.msra.gmra.mrb[12].mxu1 %v2400_v23  ;;  %2729 = vmatpush3.bf16.msra.mxu0 %v2978_v27  ;;  %v3036_v23 = vld [vmem:[#allocation9 + $0x370] sm:$0xff]   ;;  %v3040_v27 = vld [vmem:[#allocation9 + $0x378] sm:$0xff]  }
  0xdc   :  { %2751 = vmatpush3.bf16.msra.mxu1 %v2979_v28  ;;  %2730 = vmatprep.subr.bf16.mxu0 %v2980_v29  ;;  %v3041_v28 = vld [vmem:[#allocation9 + $0x3f8] sm:$0xff]  }
  0xdd   :  { %2752 = vmatprep.subr.bf16.mxu1 %v2981_v30  ;;  %2101 = vmatprep.mubr.bf16.mxu0 %v2403_v59  ;;  %v3042_v29 = vld [vmem:[#allocation9 + $0x338] sm:$0xff]  }
  0xde   :  { %2141 = vmatprep.mubr.bf16.mxu1 %v2405_v62  ;;  %v3043_v30 = vld [vmem:[#allocation9 + $0x3b8] sm:$0xff]  }
  0xdf   :  { %2731 = vmatpush3.bf16.msra.mxu0 %v2982_v31  ;;  %v820_v31 = vld [vmem:[#allocation6 + $0x30] sm:$0xff] }
  0xe0   :  { %2753 = vmatpush3.bf16.msra.mxu1 %v2983_v32  ;;  %2732 = vmatprep.subr.bf16.mxu0 %v2984_v33  ;;  %v821_v32 = vld [vmem:[#allocation6 + $0x38] sm:$0xff]  ;;  %v2406_v33 = vcombine.low %v820_v31, %v820_v31 }
  0xe1   :  { %2754 = vmatprep.subr.bf16.mxu1 %v2985_v34  ;;  %v2407_v34 = vcombine.high %v820_v31, %v820_v31 }
  0xe3   :  { %2733 = vmatpush3.bf16.msra.mxu0 %v2986_v35  ;;  %v2408_v35 = vcombine.low %v821_v32, %v821_v32 }
  0xe4   :  { %2755 = vmatpush3.bf16.msra.mxu1 %v2987_v36  ;;  %2734 = vmatprep.subr.bf16.mxu0 %v2988_v37  ;;  %v2409_v36 = vcombine.high %v821_v32, %v821_v32  ;;  %v2229_v37 = vld [vmem:[%s3340_s2] sm:$0xff] }
  0xe5   :  { %2756 = vmatprep.subr.bf16.mxu1 %v2989_v38  ;;  %vm2231_vm0 = vcmp.eq.s32.totalorder %v2229_v37, 0  ;;  %vm2244_vm1 = vcmp.eq.s32.totalorder %v2229_v37, 1  ;;  %v3190_v38 = vmov 0.0  }
  0xe7   :  { %2735 = vmatpush3.bf16.msra.mxu0 %v2990_v39  ;;  %v2538_v39 = vsel %vm2231_vm0, 1.0, %v3190_v38 }
  0xe8   :  { %2757 = vmatpush3.bf16.msra.mxu1 %v2991_v40  ;;  %2736 = vmatprep.subr.bf16.mxu0 %v2992_v41  ;;  %v2539_v40 = vsel %vm2244_vm1, 1.0, %v3190_v38 }
  0xe9   :  { %2758 = vmatprep.subr.bf16.mxu1 %v2993_v42  ;;  %v2827_v41 = vpack.i.bf16 %v2539_v40, %v2538_v39 }
  0xeb   :  { %2737 = vmatpush3.bf16.msra.mxu0 %v2994_v43  ;;  %2828 = vperm.xlu0 %2826, %v2827_v41  }
  0xec   :  { %2759 = vmatpush3.bf16.msra.mxu1 %v2995_v44  ;;  %2738 = vmatprep.subr.bf16.mxu0 %v2996_v45  ;;  %v2320_v44 = vld [vmem:[%s3344_s6] ss:$0 sm:$0xff] }
  0xed   :  { %2760 = vmatprep.subr.bf16.mxu1 %v2997_v46 }
  0xef   :  { %2739 = vmatpush3.bf16.msra.mxu0 %v2998_v47 }
  0xf0   :  { %2761 = vmatpush3.bf16.msra.mxu1 %v2999_v48  ;;  %2740 = vmatprep.subr.bf16.mxu0 %v3000_v49 }
  0xf1   :  { %2762 = vmatprep.subr.bf16.mxu1 %v3001_v50 }
  0xf3   :  { %2741 = vmatpush3.bf16.msra.mxu0 %v3002_v51 }
  0xf4   :  { %2763 = vmatpush3.bf16.msra.mxu1 %v3003_v52  ;;  %2742 = vmatprep.subr.bf16.mxu0 %v3004_v53 }
  0xf5   :  { %2764 = vmatprep.subr.bf16.mxu1 %v3005_v54 }
  0xf7   :  { %2743 = vmatpush3.bf16.msra.mxu0 %v3006_v55 }
  0xf8   :  { %2765 = vmatpush3.bf16.msra.mxu1 %v3007_v56  ;;  %2772 = vmatprep.subr.bf16.mxu0 %v3012_v63 }
  0xf9   :  { %2794 = vmatprep.subr.bf16.mxu1 %v3013_v0 }
  0xfa   :  { %2102 = vmatmul.mubr.bf16.vlgmr.msra.gmra.mrb[16].mxu0 %v2402_v58 }
  0xfb   :  { %2142 = vmatmul.mubr.bf16.vlgmr.msra.gmra.mrb[16].mxu1 %v2404_v61  ;;  %2773 = vmatpush3.bf16.msra.mxu0 %v3014_v1 }
  0xfc   :  { %2795 = vmatpush3.bf16.msra.mxu1 %v3015_v2  ;;  %2774 = vmatprep.subr.bf16.mxu0 %v3016_v3 }
  0xfd   :  { %2796 = vmatprep.subr.bf16.mxu1 %v3017_v4  ;;  %2181 = vmatprep.mubr.bf16.mxu0 %v2407_v34 }
  0xfe   :  { %2221 = vmatprep.mubr.bf16.mxu1 %v2409_v36 }
  0xff   :  { %2775 = vmatpush3.bf16.msra.mxu0 %v3018_v5 }
 0x100   :  { %2797 = vmatpush3.bf16.msra.mxu1 %v3019_v6  ;;  %2776 = vmatprep.subr.bf16.mxu0 %v3020_v7  ;;  %v2393_v6 = vld [vmem:[%s3346_s8] ss:$0 sm:$0xff] }
 0x101   :  { %2798 = vmatprep.subr.bf16.mxu1 %v3021_v8 }
 0x103   :  { %2777 = vmatpush3.bf16.msra.mxu0 %v3022_v9 }
 0x104   :  { %2799 = vmatpush3.bf16.msra.mxu1 %v3023_v10  ;;  %2778 = vmatprep.subr.bf16.mxu0 %v3024_v11 }
 0x105   :  { %2800 = vmatprep.subr.bf16.mxu1 %v3025_v12 }
 0x107   :  { %2779 = vmatpush3.bf16.msra.mxu0 %v3026_v13 }
 0x108   :  { %2801 = vmatpush3.bf16.msra.mxu1 %v3027_v14  ;;  %2780 = vmatprep.subr.bf16.mxu0 %v3028_v15  ;;  %v2239_v14 = vlaneseq }
 0x109   :  { %2802 = vmatprep.subr.bf16.mxu1 %v3029_v16 }
 0x10b   :  { %2781 = vmatpush3.bf16.msra.mxu0 %v3030_v17 }
 0x10c   :  { %2803 = vmatpush3.bf16.msra.mxu1 %v3031_v18  ;;  %2782 = vmatprep.subr.bf16.mxu0 %v3032_v19  ;;  %v2240_v18 = vshrl.u32 %v2239_v14, 7 }
 0x10d   :  { %2804 = vmatprep.subr.bf16.mxu1 %v3033_v20 }
 0x10e   :  { %v2241_v19 = vsub.s32 0, %v2240_v18  ;;  %v2254_v20 = vsub.s32 1, %v2240_v18 }
 0x10f   :  { %2783 = vmatpush3.bf16.msra.mxu0 %v3034_v21  ;;  %v2230_v21 = vld [vmem:[%s3342_s4] sm:$0xff] }
 0x110   :  { %2805 = vmatpush3.bf16.msra.mxu1 %v3035_v22  ;;  %2784 = vmatprep.subr.bf16.mxu0 %v3036_v23  ;;  %v2242_v22 = vrot.slane %v2230_v21, %v2241_v19  ;;  %v2255_v23 = vrot.slane %v2230_v21, %v2254_v20 }
 0x111   :  { %2806 = vmatprep.subr.bf16.mxu1 %v3037_v24 }
 0x113   :  { %2785 = vmatpush3.bf16.msra.mxu0 %v3038_v25 }
 0x114   :  { %2807 = vmatpush3.bf16.msra.mxu1 %v3039_v26  ;;  %2786 = vmatprep.subr.bf16.mxu0 %v3040_v27 }
 0x115   :  { %2808 = vmatprep.subr.bf16.mxu1 %v3041_v28 }
 0x117   :  { %2787 = vmatpush3.bf16.msra.mxu0 %v3042_v29 }
 0x118   :  { %2809 = vmatpush3.bf16.msra.mxu1 %v3043_v30 }
 0x11a   :  { %2182 = vmatmul.mubr.bf16.vlgmr.msra.gmra.mrb[20].mxu0 %v2406_v33 }
 0x11b   :  { %2222 = vmatmul.mubr.bf16.vlgmr.msra.gmra.mrb[20].mxu1 %v2408_v35 }
 0x14d   :  { %v2568_v42 = vpop.f32.mrb[0].mxu0 }
 0x14e   :  { %v2590_v43 = vpop.f32.mrb[0].mxu1  ;;  %v2569_v45 = vpop.f32.mrb[1].mxu0 }
 0x14f   :  { %v2591_v46 = vpop.f32.mrb[1].mxu1  ;;  %v2570_v47 = vadd.f32 %v2569_v45, %v2568_v42  ;;  %v2571_v49 = vpop.f32.mrb[2].mxu0 }
 0x150   :  { %v2592_v48 = vadd.f32 %v2591_v46, %v2590_v43  ;;  %v2593_v50 = vpop.f32.mrb[2].mxu1  ;;  %v2572_v51 = vpop.f32.mrb[3].mxu0 }
 0x151   :  { %v2594_v52 = vpop.f32.mrb[3].mxu1  ;;  %v689_v53 = vadd.f32 %v2570_v47, %v2320_v44 }
 0x153   :  { %v729_v54 = vadd.f32 %v2592_v48, %v689_v53 }
 0x16a   :  { %v2829_v24 = vpop.permute.xlu0 %2828 }
 0x16b   :  { %v2831_v25 = vunpack.i.h.bf16 %v2829_v24  ;;  %v2830_v26 = vunpack.i.l.bf16 %v2829_v24 }
 0x16d   :  { %v2612_v55 = vpop.f32.mrb[4].mxu0  ;;  %v2256_v27 = vmul.f32 %v2831_v25, %v2255_v23  ;;  %v2243_v28 = vmul.f32 %v2830_v26, %v2242_v22  ;;  %v2294_v22 = vstv %s2540_s15 }
 0x16e   :  { %v2634_v56 = vpop.f32.mrb[4].mxu1  ;;  %v2613_v57 = vpop.f32.mrb[5].mxu0 }
 0x16f   :  { %v2635_v58 = vpop.f32.mrb[5].mxu1  ;;  %v2614_v59 = vadd.f32 %v2613_v57, %v2612_v55  ;;  %v2615_v61 = vpop.f32.mrb[6].mxu0  ;;  %v2257_v29 = vadd.f32 %v2256_v27, %v2243_v28 }
 0x170   :  { %v2636_v60 = vadd.f32 %v2635_v58, %v2634_v56  ;;  %v2637_v62 = vpop.f32.mrb[6].mxu1  ;;  %v2616_v63 = vpop.f32.mrb[7].mxu0 }
 0x171   :  { %v2638_v0 = vpop.f32.mrb[7].mxu1  ;;  %v769_v1 = vadd.f32 %v2614_v59, %v729_v54  ;;  %v2267_v30 = vmul.f32 %v2257_v29, %v2257_v29 }
 0x172   :  { %v2258_v0 = vld [vmem:[%s3341_s3] sm:$0xf]  ;;  %s3191_s3 = smov [#allocation12]  }
 0x173   :  { %v3309_v2 = vadd.f32 %v2636_v60, %v769_v1  ;;  %2268 = vadd.xlane.f32.xlu1 %v2267_v30  ;;  %s2304_s16 = sshll.u32 %s3191_s3, 4  ;;  %s2305_s16 = int_to_ptr.vmem [resolvable:$true] %s2304_s16 }
 0x174   :  { %s3150_s21 = scalar_lea.vmem %s2305_s16, 256  ;;  %p3155_p10 = scmp.lt.s32.totalorder %s2305_s16, %s2305_s16 }
 0x175   :  { %v2260_v3 = vmul.f32 %v3309_v2, %v3309_v2  ;;  %p3151_p9 = scmp.ne.s32.totalorder %s2305_s16, %s3150_s21  ;;  %p3156_p11 = scmp.lt.s32.totalorder %s3150_s21, %s3150_s21 }
 0x177   :  { %2261 = vadd.xlane.f32.xlu0 %v2260_v3  ;;  %p3157_p12 = por %p3156_p11, %p3155_p10 }
 0x179   :  { %p3158_p13 = pnand %p3157_p12, %p3151_p9 }
 0x18d   :  { %v2656_v4 = vpop.f32.mrb[8].mxu0 }
 0x18e   :  { %v2678_v5 = vpop.f32.mrb[8].mxu1  ;;  %v2657_v7 = vpop.f32.mrb[9].mxu0 }
 0x18f   :  { %v2658_v8 = vadd.f32 %v2657_v7, %v2656_v4  ;;  %v2679_v9 = vpop.f32.mrb[9].mxu1  ;;  %v2659_v10 = vpop.f32.mrb[10].mxu0 }
 0x190   :  { %v2680_v11 = vadd.f32 %v2679_v9, %v2678_v5  ;;  %v2681_v12 = vpop.f32.mrb[10].mxu1  ;;  %v2660_v13 = vpop.f32.mrb[11].mxu0  ;;  %v2259_v5 = vunpack.c.l.bf16 %v2258_v0 }
 0x191   :  { %v1944_v15 = vadd.f32 %v2658_v8, %v2393_v6  ;;  %v2682_v16 = vpop.f32.mrb[11].mxu1 }
 0x192   :  { %v2271_v7 = vmul.f32 %v2259_v5, %v2259_v5 }
 0x193   :  { %v1984_v17 = vadd.f32 %v2680_v11, %v1944_v15 }
 0x1ad   :  { %v2700_v31 = vpop.f32.mrb[12].mxu0 }
 0x1ae   :  { %v2722_v32 = vpop.f32.mrb[12].mxu1  ;;  %v2701_v33 = vpop.f32.mrb[13].mxu0 }
 0x1af   :  { %v2702_v34 = vadd.f32 %v2701_v33, %v2700_v31  ;;  %v2723_v35 = vpop.f32.mrb[13].mxu1  ;;  %v2703_v36 = vpop.f32.mrb[14].mxu0 }
 0x1b0   :  { %v2724_v37 = vadd.f32 %v2723_v35, %v2722_v32  ;;  %v2725_v38 = vpop.f32.mrb[14].mxu1  ;;  %v2704_v39 = vpop.f32.mrb[15].mxu0 }
 0x1b1   :  { %v2024_v40 = vadd.f32 %v2702_v34, %v1984_v17  ;;  %v2726_v41 = vpop.f32.mrb[15].mxu1  ;;  %v2291_v17 = vstv %s2290_s14 }
 0x1b3   :  { %v2064_v42 = vadd.f32 %v2724_v37, %v2024_v40 }
 0x1cd   :  { %v2744_v43 = vpop.f32.mrb[16].mxu0 }
 0x1ce   :  { %v2766_v44 = vpop.f32.mrb[16].mxu1  ;;  %v2745_v45 = vpop.f32.mrb[17].mxu0 }
 0x1cf   :  { %v2767_v46 = vpop.f32.mrb[17].mxu1  ;;  %v2746_v47 = vadd.f32 %v2745_v45, %v2744_v43  ;;  %v2747_v49 = vpop.f32.mrb[18].mxu0 }
 0x1d0   :  { %v2768_v48 = vadd.f32 %v2767_v46, %v2766_v44  ;;  %v2769_v50 = vpop.f32.mrb[18].mxu1  ;;  %v2748_v51 = vpop.f32.mrb[19].mxu0 }
 0x1d1   :  { %v2770_v52 = vpop.f32.mrb[19].mxu1  ;;  %v2104_v53 = vadd.f32 %v2746_v47, %v2064_v42 }
 0x1d3   :  { %v2144_v54 = vadd.f32 %v2768_v48, %v2104_v53 }
 0x1ed   :  { %v2788_v55 = vpop.f32.mrb[20].mxu0 }
 0x1ee   :  { %v2810_v56 = vpop.f32.mrb[20].mxu1  ;;  %v2789_v57 = vpop.f32.mrb[21].mxu0 }
 0x1ef   :  { %v2790_v58 = vadd.f32 %v2789_v57, %v2788_v55  ;;  %v2811_v59 = vpop.f32.mrb[21].mxu1  ;;  %v2791_v60 = vpop.f32.mrb[22].mxu0 }
 0x1f0   :  { %v2812_v61 = vadd.f32 %v2811_v59, %v2810_v56  ;;  %v2813_v62 = vpop.f32.mrb[22].mxu1  ;;  %v2792_v63 = vpop.f32.mrb[23].mxu0 }
 0x1f1   :  { %v2184_v1 = vadd.f32 %v2790_v58, %v2144_v54  ;;  %v2814_v3 = vpop.f32.mrb[23].mxu1 }
 0x1f3   :  { %v2224_v4 = vadd.f32 %v2812_v61, %v2184_v1 }
 0x1f5   :  { %v2263_v6 = vmul.f32 %v2224_v4, %v2224_v4 }
 0x1f7   :  { %2264 = vadd.xlane.f32.xlu1 %v2263_v6 }
 0x1fb   :  { %2272 = vadd.xlane.f32.xlu1 %v2271_v7 }
 0x200   :  { %v2269_v8 = vpop.xlane.xlu1 %2268 }
 0x204   :  { %v2262_v9 = vpop.xlane.xlu0 %2261 }
 0x284   :  { %v2265_v10 = vpop.xlane.xlu1 %2264 }
 0x285   :  { %v2266_v11 = vadd.f32 %v2265_v10, %v2262_v9 }
 0x287   :  { %v2270_v12 = vadd.f32 %v2269_v8, %v2266_v11 }
 0x288   :  { %v2273_v13 = vpop.xlane.xlu1 %2272 }
 0x289   :  { %v2274_v14 = vadd.f32 %v2273_v13, %v2270_v12 }
 0x28b   :  { %v2275_v15 = vmax.f32 %v2274_v14, 1e-24 }
 0x28d   :  { %3048 = vrsqrt.f32 %v2275_v15 }
 0x297   :  { %v3049_v16 = vpop.eup %3048 }
 0x298   :  { %v2277_v18 = vmul.f32 %v3049_v16, %v2274_v14  ;;  %v2278_v19 = vmul.f32 %v3049_v16, %v3309_v2  ;;  %v2281_v20 = vmul.f32 %v3049_v16, %v2224_v4  ;;  %v2284_v21 = vmul.f32 %v3049_v16, %v2257_v29 }
 0x299   :  { %v2287_v23 = vmul.f32 %v3049_v16, %v2259_v5 }
 0x29a   :  { %v2292_v24 = vmul.f32 %v2291_v17, %v2277_v18  ;;  %v2544_v25 = vpack.c.bf16 %v2281_v20, %v2278_v19 }
 0x29b   :  { %v2549_v26 = vpack.c.bf16 %v2287_v23, %v2284_v21 }
 0x29c   :  { %v2295_v27 = vadd.f32 %v2294_v22, %v2292_v24  ;;  %2545 = vst [vmem:[#allocation12] sm:$0xff] %v2544_v25  }
 0x29d   :  { %2551 = vst [vmem:[#allocation12 + $0x8] sm:$0xff] %v2549_v26  }
 0x29e   :  { %2297 = vst.msk [vmem:[%s3349_s11] sm:$0xff] %vm2296_vm2, %v2295_v27 }
 0x29f   :  { %3161 = shalt.err (!%p3158_p13)
}
 0x2a0   :  { %s3162_s22 = scalar_lea.hbm %s3348_s10, 256 }
 0x2a1   :  { %p3163_p0 = scmp.ne.s32.totalorder %s3348_s10, %s3162_s22  ;;  %p3166_p1 = scmp.lt.u32.totalorder %s3162_s22, %s3348_s10 }
 0x2a3   :  { %p3168_p2 = pnand %p3166_p1, %p3163_p0 }
 0x2a5   :  { %3171 = shalt.err (!%p3168_p2)
}
 0x2a6   :  { %2307 = dma.vmem_to_hbm [thread:$0]  %s2305_s16, 256, %s3348_s10, [#allocation4]  }
 0x2a7   :  { %3180 = dma.done.wait [#allocation4], 256  }
 0x2a8   :  { %3181 = vsyncadd [#allocation4], 4294967040 }
 0x2a9   :  { %2315 = vsyncpa [#allocation3], 1 }
 0x2aa   :  { %2316 = vsyncpa [#allocation7], 1 }
 0x2ab   :  { %2317 = vsyncpa [#allocation10], 1 }
 0x2ac   :  { %2318 = vsyncpa [#allocation4], 1 }
 0x2ad   :  { %2319 = vsyncpa [#allocation5], 1 }

</bundles_post_ra>
